<compile_context>
chip_gen: v7x
topology: tpu7x:2x2x1
jax: 0.10.0
libtpu: 0.0.40
codegen_flags: <defaults>
</compile_context>

<pallas_src>
import functools

import jax
import jax.numpy as jnp
from jax import lax
from jax.experimental import pallas as pl
from jax.experimental.pallas import tpu as pltpu


def _pooled_tile(x_ref, halo_ref):
    """3x3 / stride-2 / pad-1 avg-pool (count_include_pad=False) of one row tile.

    x_ref:    (1, 2*T, W, C) block -> input rows [2*T*r, 2*T*r + 2*T)
    halo_ref: (1, 1, W, C)   block -> input row  2*T*r - 1 (clamped; masked at r==0)
    returns:  (T, Wo, C) float32 pooled values for output rows [T*r, T*r + T).
    """
    r = pl.program_id(1)

    x = x_ref[0].astype(jnp.float32)            # (2T, W, C)
    halo = halo_ref[0, 0].astype(jnp.float32)   # (W, C)
    two_t, w, c = x.shape
    t = two_t // 2
    wo = w // 2

    # ---- H direction: rows 2g-1, 2g, 2g+1 (out-of-image rows contribute 0) ----
    xr = x.reshape(t, 2, w, c)
    ev = xr[:, 0]                               # rows 2g
    od = xr[:, 1]                               # rows 2g+1
    # rows 2g-1: halo row for the first output row of the tile, else od shifted
    # down by one (cheap: all shifts are on the major axis).
    top = jnp.where(r > 0, halo, jnp.zeros_like(halo))
    prev = jnp.concatenate([top[None], od[:-1]], axis=0)
    rsum = ev + od + prev                       # (T, W, C)

    # ---- W direction on the half-height array: cols 2j-1, 2j, 2j+1 ----
    r4 = rsum.reshape(t, wo, 2, c)
    evw = r4[:, :, 0]                           # cols 2j
    odw = r4[:, :, 1]                           # cols 2j+1
    # cols 2j-1 == odw shifted right by one output column (zero at j == 0).
    # TODO(synk): a pltpu.roll along the sublane axis would put this +1 shift
    # on the otherwise-idle XLU slot instead of a pad/slice copy.
    odw_prev = jnp.pad(odw, ((0, 0), (1, 0), (0, 0)))[:, :wo]
    csum = evw + odw + odw_prev                 # (T, Wo, C)

    # ---- divide by the number of *valid* window elements (4 / 6 / 9) ----
    half = jnp.float32(0.5)
    third = jnp.float32(1.0 / 3.0)
    orow = r * t + lax.broadcasted_iota(jnp.int32, (t, wo), 0)   # global out row
    ocol = lax.broadcasted_iota(jnp.int32, (t, wo), 1)           # global out col
    inv = jnp.where(orow == 0, half, third) * jnp.where(ocol == 0, half, third)
    return csum * inv[:, :, None]


def _pool_kernel(x_ref, halo_ref, o_ref):
    # dim == dim_out: expand is nn.Identity(); just store the pooled tile.
    o_ref[0] = _pooled_tile(x_ref, halo_ref).astype(o_ref.dtype)


def _pool_expand_kernel(x_ref, halo_ref, w_ref, b_ref, o_ref, *, use_bf16):
    pooled = _pooled_tile(x_ref, halo_ref)      # (T, Wo, C) f32
    t, wo, c = pooled.shape
    co = w_ref.shape[1]
    lhs = pooled.reshape(t * wo, c)
    if use_bf16:                                # feed the MXU bf16 only when it pays
        lhs = lhs.astype(jnp.bfloat16)
        rhs = w_ref[...].astype(jnp.bfloat16)
    else:
        rhs = w_ref[...].astype(jnp.float32)
    out = jnp.dot(lhs, rhs, preferred_element_type=jnp.float32)
    out = out + b_ref[...].astype(jnp.float32)  # (T*Wo, Co) + (1, Co)
    o_ref[0] = out.reshape(t, wo, co).astype(o_ref.dtype)


def _pick_row_tile(ho, target=32):
    """Largest divisor of Ho not exceeding `target` (keeps per-step VMEM small)."""
    t = min(ho, target)
    while ho % t:
        t -= 1
    return t


def downsample2d_nhwc(x_nhwc, weight=None, bias=None, *, row_tile=None):
    """AvgPool(3,2,1, count_include_pad=False) + optional 1x1 conv. NHWC in/out."""
    n, h, w, c = x_nhwc.shape
    assert h % 2 == 0 and w % 2 == 0, "kernel assumes even spatial dims"
    ho, wo = h // 2, w // 2
    t = _pick_row_tile(ho) if row_tile is None else row_tile
    assert ho % t == 0, "row_tile must divide H // 2"

    in_specs = [
        # main block: input rows [2*t*r, 2*t*r + 2*t)
        pl.BlockSpec((1, 2 * t, w, c), lambda i, r: (i, r, 0, 0)),
        # halo block: input row 2*t*r - 1 (block height 1 => element index),
        # clamped at 0; the kernel masks it out when r == 0.
        pl.BlockSpec((1, 1, w, c),
                     lambda i, r: (i, jnp.maximum(2 * t * r - 1, 0), 0, 0)),
    ]
    operands = [x_nhwc, x_nhwc]

    if weight is None:                          # dim == dim_out -> nn.Identity()
        co = c
        kernel = _pool_kernel
    else:
        co = weight.shape[0]
        w_mat = weight.reshape(co, c).T         # (C, Co) for the 1x1 conv matmul
        b_vec = bias if bias is not None else jnp.zeros((co,), w_mat.dtype)
        use_bf16 = (c >= 128 and co >= 128)
        kernel = functools.partial(_pool_expand_kernel, use_bf16=use_bf16)
        in_specs += [pl.BlockSpec((c, co), lambda i, r: (0, 0)),
                     pl.BlockSpec((1, co), lambda i, r: (0, 0))]
        operands += [w_mat, b_vec.reshape(1, co)]

    return pl.pallas_call(
        kernel,
        out_shape=jax.ShapeDtypeStruct((n, ho, wo, co), x_nhwc.dtype),
        grid_spec=pltpu.PrefetchScalarGridSpec(
            num_scalar_prefetch=0,
            grid=(n, ho // t),
            in_specs=in_specs,
            out_specs=pl.BlockSpec((1, t, wo, co), lambda i, r: (i, r, 0, 0)),
        ),
        compiler_params=pltpu.CompilerParams(
            dimension_semantics=("parallel", "parallel")),
    )(*operands)


def downsample2d(x_nchw, weight=None, bias=None, *, row_tile=None):
    """PyTorch-facing NCHW wrapper: x (N,C,H,W), weight (Co,C,1,1) or None, bias (Co,).

    # TODO(synk): these two transposes roughly triple HBM traffic around a
    # memory-bound kernel; keep activations NHWC model-wide and call
    # downsample2d_nhwc directly to avoid them.
    """
    x = jnp.transpose(x_nchw, (0, 2, 3, 1))     # NCHW -> NHWC
    out = downsample2d_nhwc(x, weight, bias, row_tile=row_tile)
    return jnp.transpose(out, (0, 3, 1, 2))     # NHWC -> NCHW


def _reference(x_nchw, weight=None, bias=None):
    # pure-JAX reference: avg-pool (count_include_pad=False) + optional 1x1 conv.
    win, strides = (1, 1, 3, 3), (1, 1, 2, 2)
    pad = ((0, 0), (0, 0), (1, 1), (1, 1))
    s = lax.reduce_window(x_nchw, 0.0, lax.add, win, strides, pad)
    cnt = lax.reduce_window(jnp.ones_like(x_nchw), 0.0, lax.add, win, strides, pad)
    pooled = s / cnt
    if weight is None:
        return pooled
    co = weight.shape[0]
    out = jnp.einsum("nchw,oc->nohw", pooled, weight.reshape(co, -1))
    return out + bias[None, :, None, None]


if __name__ == "__main__":
    key = jax.random.PRNGKey(0)
    k1, k2, k3, k4, k5 = jax.random.split(key, 5)

    # Case 1: expand path (dim=4 -> dim_out=8), single row tile.
    n, c, h, w_, co = 2, 4, 16, 16, 8
    x = jax.random.normal(k1, (n, c, h, w_), jnp.float32)
    wt = jax.random.normal(k2, (co, c, 1, 1), jnp.float32) * 0.1
    b = jax.random.normal(k3, (co,), jnp.float32) * 0.1
    out = jax.block_until_ready(downsample2d(x, wt, b))
    ref = _reference(x, wt, b)
    assert out.shape == (n, co, h // 2, w_ // 2)
    assert jnp.allclose(out, ref, atol=1e-5, rtol=1e-5)

    # Case 2: batch 1, multiple row tiles (exercises the halo-row path on both
    # "parallel" grid axes).
    x2 = jax.random.normal(k4, (1, c, 32, 32), jnp.float32)
    out2 = jax.block_until_ready(downsample2d(x2, wt, b, row_tile=4))
    ref2 = _reference(x2, wt, b)
    assert jnp.allclose(out2, ref2, atol=1e-5, rtol=1e-5)

    # Case 3: identity path (dim == dim_out -> pool only).
    x3 = jax.random.normal(k5, (2, 8, 16, 16), jnp.float32)
    out3 = jax.block_until_ready(downsample2d(x3))
    ref3 = _reference(x3)
    assert jnp.allclose(out3, ref3, atol=1e-5, rtol=1e-5)

    print("KERNEL_OK")
</pallas_src>

<mosaic_0001>
module attributes {stable_mosaic.version = 11 : i64} {
  func.func @_pool_expand_kernel(%arg0: i32, %arg1: i32, %arg2: memref<1x16x16x4xf32, #tpu.memory_space<vmem>>, %arg3: memref<1x1x16x4xf32, #tpu.memory_space<vmem>>, %arg4: memref<4x8xf32, #tpu.memory_space<vmem>>, %arg5: memref<1x8xf32, #tpu.memory_space<vmem>>, %arg6: memref<1x8x8x8xf32, #tpu.memory_space<vmem>>) attributes {dimension_semantics = [#tpu.dimension_semantics<parallel>, #tpu.dimension_semantics<parallel>], iteration_bounds = array<i64: 2, 1>, scalar_prefetch = 0 : i64, scratch_operands = 0 : i64, tpu.core_type = #tpu.core_type<tc>, window_params = [{transform_indices = @transform_0, window_bounds = array<i64: 1, 16, 16, 4>}, {transform_indices = @transform_1, window_bounds = array<i64: 1, 1, 16, 4>}, {pipeline_mode = #tpu.pipeline_mode<synchronous>, transform_indices = @transform_2, window_bounds = array<i64: 4, 8>}, {pipeline_mode = #tpu.pipeline_mode<synchronous>, transform_indices = @transform_3, window_bounds = array<i64: 1, 8>}, {transform_indices = @transform_4, window_bounds = array<i64: 1, 8, 8, 8>}]} {
    %c0 = arith.constant 0 : index
    %c0_0 = arith.constant 0 : index
    %c0_1 = arith.constant 0 : index
    %c0_2 = arith.constant 0 : index
    %0 = vector.load %arg2[%c0, %c0_0, %c0_1, %c0_2] : memref<1x16x16x4xf32, #tpu.memory_space<vmem>>, vector<1x16x16x4xf32>
    %1 = vector.shape_cast %0 : vector<1x16x16x4xf32> to vector<16x16x4xf32>
    %c0_3 = arith.constant 0 : index
    %c0_4 = arith.constant 0 : index
    %c0_5 = arith.constant 0 : index
    %c0_6 = arith.constant 0 : index
    %2 = vector.load %arg3[%c0_3, %c0_4, %c0_5, %c0_6] : memref<1x1x16x4xf32, #tpu.memory_space<vmem>>, vector<1x1x16x4xf32>
    %3 = vector.shape_cast %2 : vector<1x1x16x4xf32> to vector<16x4xf32>
    %4 = vector.shape_cast %1 : vector<16x16x4xf32> to vector<8x2x16x4xf32>
    %5 = vector.extract_strided_slice %4 {offsets = [0, 0, 0, 0], sizes = [8, 1, 16, 4], strides = [1, 1, 1, 1]} : vector<8x2x16x4xf32> to vector<8x1x16x4xf32>
    %6 = vector.shape_cast %5 : vector<8x1x16x4xf32> to vector<8x16x4xf32>
    %7 = vector.extract_strided_slice %4 {offsets = [0, 1, 0, 0], sizes = [8, 1, 16, 4], strides = [1, 1, 1, 1]} : vector<8x2x16x4xf32> to vector<8x1x16x4xf32>
    %8 = vector.shape_cast %7 : vector<8x1x16x4xf32> to vector<8x16x4xf32>
    %c0_i32 = arith.constant 0 : i32
    %9 = arith.cmpi sgt, %arg1, %c0_i32 : i32
    %cst = arith.constant 0.000000e+00 : f32
    %10 = vector.broadcast %cst : f32 to vector<16x4xf32>
    %11 = arith.select %9, %3, %10 : vector<16x4xf32>
    %12 = vector.shape_cast %11 : vector<16x4xf32> to vector<1x16x4xf32>
    %13 = vector.extract_strided_slice %8 {offsets = [0, 0, 0], sizes = [7, 16, 4], strides = [1, 1, 1]} : vector<8x16x4xf32> to vector<7x16x4xf32>
    %14 = tpu.concatenate %12, %13 in 0 : vector<1x16x4xf32>, vector<7x16x4xf32> -> vector<8x16x4xf32>
    %15 = arith.addf %6, %8 : vector<8x16x4xf32>
    %16 = arith.addf %15, %14 : vector<8x16x4xf32>
    %17 = vector.shape_cast %16 : vector<8x16x4xf32> to vector<8x8x2x4xf32>
    %18 = vector.extract_strided_slice %17 {offsets = [0, 0, 0, 0], sizes = [8, 8, 1, 4], strides = [1, 1, 1, 1]} : vector<8x8x2x4xf32> to vector<8x8x1x4xf32>
    %19 = vector.shape_cast %18 : vector<8x8x1x4xf32> to vector<8x8x4xf32>
    %20 = vector.extract_strided_slice %17 {offsets = [0, 0, 1, 0], sizes = [8, 8, 1, 4], strides = [1, 1, 1, 1]} : vector<8x8x2x4xf32> to vector<8x8x1x4xf32>
    %21 = vector.shape_cast %20 : vector<8x8x1x4xf32> to vector<8x8x4xf32>
    %c0_i32_7 = arith.constant 0 : i32
    %22 = arith.sitofp %c0_i32_7 : i32 to f32
    %23 = vector.broadcast %22 : f32 to vector<8x1x4xf32>
    %24 = tpu.concatenate %23, %21 in 1 : vector<8x1x4xf32>, vector<8x8x4xf32> -> vector<8x9x4xf32>
    %25 = vector.extract_strided_slice %24 {offsets = [0, 0, 0], sizes = [8, 8, 4], strides = [1, 1, 1]} : vector<8x9x4xf32> to vector<8x8x4xf32>
    %26 = arith.addf %19, %21 : vector<8x8x4xf32>
    %27 = arith.addf %26, %25 : vector<8x8x4xf32>
    %c8_i32 = arith.constant 8 : i32
    %28 = arith.muli %arg1, %c8_i32 : i32
    %29 = tpu.iota {dimensions = array<i32: 0>} : vector<8x8xi32>
    %30 = vector.broadcast %28 : i32 to vector<8x8xi32>
    %31 = arith.addi %30, %29 : vector<8x8xi32>
    %32 = tpu.iota {dimensions = array<i32: 1>} : vector<8x8xi32>
    %c0_i32_8 = arith.constant 0 : i32
    %33 = vector.broadcast %c0_i32_8 : i32 to vector<8x8xi32>
    %34 = arith.cmpi eq, %31, %33 : vector<8x8xi32>
    %cst_9 = arith.constant 5.000000e-01 : f32
    %cst_10 = arith.constant 0.333333343 : f32
    %35 = vector.broadcast %cst_9 : f32 to vector<8x8xf32>
    %36 = vector.broadcast %cst_10 : f32 to vector<8x8xf32>
    %37 = arith.select %34, %35, %36 : vector<8x8xi1>, vector<8x8xf32>
    %c0_i32_11 = arith.constant 0 : i32
    %38 = vector.broadcast %c0_i32_11 : i32 to vector<8x8xi32>
    %39 = arith.cmpi eq, %32, %38 : vector<8x8xi32>
    %cst_12 = arith.constant 5.000000e-01 : f32
    %cst_13 = arith.constant 0.333333343 : f32
    %40 = vector.broadcast %cst_12 : f32 to vector<8x8xf32>
    %41 = vector.broadcast %cst_13 : f32 to vector<8x8xf32>
    %42 = arith.select %39, %40, %41 : vector<8x8xi1>, vector<8x8xf32>
    %43 = arith.mulf %37, %42 : vector<8x8xf32>
    %44 = vector.shape_cast %43 : vector<8x8xf32> to vector<8x8x1xf32>
    %45 = vector.broadcast %44 : vector<8x8x1xf32> to vector<8x8x4xf32>
    %46 = arith.mulf %27, %45 : vector<8x8x4xf32>
    %47 = vector.shape_cast %46 : vector<8x8x4xf32> to vector<64x4xf32>
    %c0_14 = arith.constant 0 : index
    %c0_15 = arith.constant 0 : index
    %48 = vector.load %arg4[%c0_14, %c0_15] : memref<4x8xf32, #tpu.memory_space<vmem>>, vector<4x8xf32>
    %cst_16 = arith.constant dense<0.000000e+00> : vector<64x8xf32>
    %49 = tpu.matmul %47, %48, %cst_16 {dimension_numbers = #tpu.dot_dimension_numbers<[1], [0], [0], [1], [0, 0, 1, 1], [], []>} : vector<64x4xf32>, vector<4x8xf32>, vector<64x8xf32> -> vector<64x8xf32>
    %c0_17 = arith.constant 0 : index
    %c0_18 = arith.constant 0 : index
    %50 = vector.load %arg5[%c0_17, %c0_18] : memref<1x8xf32, #tpu.memory_space<vmem>>, vector<1x8xf32>
    %51 = vector.broadcast %50 : vector<1x8xf32> to vector<64x8xf32>
    %52 = arith.addf %49, %51 : vector<64x8xf32>
    %53 = vector.shape_cast %52 : vector<64x8xf32> to vector<8x8x8xf32>
    %c0_19 = arith.constant 0 : index
    %c0_20 = arith.constant 0 : index
    %c0_21 = arith.constant 0 : index
    %c0_22 = arith.constant 0 : index
    %54 = vector.load %arg6[%c0_19, %c0_20, %c0_21, %c0_22] : memref<1x8x8x8xf32, #tpu.memory_space<vmem>>, vector<1x8x8x8xf32>
    %55 = vector.shape_cast %54 : vector<1x8x8x8xf32> to vector<8x8x8xf32>
    %56 = vector.shape_cast %53 : vector<8x8x8xf32> to vector<1x8x8x8xf32>
    tpu.vector_store %arg6[%c0_19, %c0_20, %c0_21, %c0_22], %56 {strides = array<i32>} : memref<1x8x8x8xf32, #tpu.memory_space<vmem>>, vector<1x8x8x8xf32>,
    return
  }
  func.func @transform_0(%arg0: i32, %arg1: i32) -> (i32, i32, i32, i32) {
    %c0_i32 = arith.constant 0 : i32
    %c0_i32_0 = arith.constant 0 : i32
    %c0_i32_1 = arith.constant 0 : i32
    return %arg0, %arg1, %c0_i32, %c0_i32_0 : i32, i32, i32, i32
  }
  func.func @transform_1(%arg0: i32, %arg1: i32) -> (i32, i32, i32, i32) {
    %c16_i32 = arith.constant 16 : i32
    %0 = arith.muli %c16_i32, %arg1 : i32
    %c1_i32 = arith.constant 1 : i32
    %1 = arith.subi %0, %c1_i32 : i32
    %c0_i32 = arith.constant 0 : i32
    %2 = arith.maxsi %1, %c0_i32 : i32
    %c0_i32_0 = arith.constant 0 : i32
    %c0_i32_1 = arith.constant 0 : i32
    %c0_i32_2 = arith.constant 0 : i32
    return %arg0, %2, %c0_i32_0, %c0_i32_1 : i32, i32, i32, i32
  }
  func.func @transform_2(%arg0: i32, %arg1: i32) -> (i32, i32) {
    %c0_i32 = arith.constant 0 : i32
    %c0_i32_0 = arith.constant 0 : i32
    %c0_i32_1 = arith.constant 0 : i32
    return %c0_i32, %c0_i32_0 : i32, i32
  }
  func.func @transform_3(%arg0: i32, %arg1: i32) -> (i32, i32) {
    %c0_i32 = arith.constant 0 : i32
    %c0_i32_0 = arith.constant 0 : i32
    %c0_i32_1 = arith.constant 0 : i32
    return %c0_i32, %c0_i32_0 : i32, i32
  }
  func.func @transform_4(%arg0: i32, %arg1: i32) -> (i32, i32, i32, i32) {
    %c0_i32 = arith.constant 0 : i32
    %c0_i32_0 = arith.constant 0 : i32
    %c0_i32_1 = arith.constant 0 : i32
    return %arg0, %arg1, %c0_i32, %c0_i32_0 : i32, i32, i32, i32
  }
}

</mosaic_0001>

<bundles_post_ra>
// kernel: tpu_custom_call.1
= control target key start
LH: loop header
LB: loop body
LE: loop exit
PB: predicated region body
PF: predicated region fallthrough
CT: control target
= control target key end

     0   :  { %9 = vsyncpa [#allocation3], 0  ;;  %s4101_s0 = inlined_call_operand.vmem [shape: f32[2,16,16,4], index: 0, kind: input, shape index: {}]   ;;  %s4102_s1 = inlined_call_operand.vmem [shape: f32[2,16,16,4], index: 1, kind: input, shape index: {}]   ;;  %s4103_s2 = inlined_call_operand.vmem [shape: f32[4,8], index: 2, kind: input, shape index: {}]   ;;  %s4104_s3 = inlined_call_operand.vmem [shape: f32[1,8], index: 3, kind: input, shape index: {}]   ;;  %s4105_s4 = inlined_call_operand.hbm [shape: f32[2,8,8,8], index: 4, kind: output, shape index: {}]  }
   0x1   :  { %11 = vsyncpa [#allocation3 + $0x1], 0  ;;  %s2964_s15 = smov 0   ;;  %s2966_s16 = smov 0  }
   0x2   :  { %s2968_s17 = smov 0   ;;  %s2970_s18 = smov 0  }
   0x3   :  { %s2972_s1 = smov 0   ;;  %s2974_s19 = smov 0  }
   0x4 LB: > { %s2670_s20 = sadd.s32 4294967295, %s2928_s19   ;;  %s2671_s21 = sadd.s32 4294967294, %s2928_s19   ;;  %s2928_s19 = sphi %s2974_s19, %s17_s19   ;;  %s2924_s1 = sphi %s2972_s1, %s4280_s1   ;;  %s2920_s18 = sphi %s2970_s18, %s4279_s18   ;;  %s2916_s17 = sphi %s2968_s17, %s4278_s17   ;;  %s2912_s16 = sphi %s2966_s16, %s4277_s16   ;;  %s2908_s15 = sphi %s2964_s15, %s4276_s15  }
   0x5   : > { %s29_s22 = sadd.s32 1, %s2924_s1  ;;  %s144_s23 = sadd.s32 1, %s2916_s17 }
   0x6   : > { %p31_p0 = scmp.ge.s32.totalorder %s29_s22, 2  ;;  %p154_p1 = scmp.ne.s32.totalorder %s2916_s17, %s2912_s16 }
   0x7   : > { %p155_p2 = scmp.eq.s32.totalorder %s2670_s20, 1  ;;  %p160_p3 = scmp.ne.s32.totalorder %s2912_s16, %s2908_s15 }
   0x8   : > { %s4282_s22 = smov (%p31_p0, %s29_s22), 0  ;;  %p161_p5 = scmp.eq.s32.totalorder %s2671_s21, 1 }
   0x9   : > { %p3004_p4 = por %p155_p2, %p154_p1  ;;  %s139_s25 = ssub.s32 %s2924_s1, %s4282_s22 }
   0xa   : > { %p2674_p6 = scmp.ge.s32.totalorder %s2928_s19, 1  ;;  %p142_p7 = scmp.eq.s32.totalorder %s139_s25, 0 }
   0xb   : > { %p3011_p8 = por %p161_p5, %p160_p3  ;;  %p219_p9 = scmp.lt.s32.totalorder %s2928_s19, 3 }
   0xc   : > { %s3017_s27 = scalar_select %p142_p7, %s2916_s17, %s144_s23  }
   0xd   : > { %p220_p10 = pnand %p2674_p6, %p219_p9 }
   0xf   : > { %223 = sbr.rel (%p220_p10) target bundleno = 454 (0x1c6), region = 36 }
  0x16   : > { %v384_v0 = vlaneseq  ;;  %p264_p11 = scmp.lt.s32.totalorder %s2920_s18, 1  ;;  %v2930_v3 = vmov 269488144   ;;  %v2931_v7 = vmov 0.33333334   ;;  %vm940_vm2 = vcmask 1042434  }
  0x17   : > { %v1648_v4 = vunpack.c.l.s4 %v2930_v3  ;;  %v2932_v18 = vmov 842150450   ;;  %v2933_v20 = vmov 1414812756   ;;  %v2934_v39 = vmov 1987475062  }
  0x18   : > { %v3020_v1 = vshrl.u32 %v384_v0, 7  ;;  %v1577_v2 = vand.u32 127, %v384_v0  ;;  %s265_s28 = scalar_select %p264_p11, %s2920_s18, 1  ;;  %v1655_v19 = vunpack.c.l.s4 %v2932_v18  ;;  %v1662_v21 = vunpack.c.l.s4 %v2933_v20 }
  0x19   : > { %v1649_v17 = vunpack.c.0.s8 %v1648_v4  ;;  %v1669_v40 = vunpack.c.l.s4 %v2934_v39  ;;  %v2935_v54 = vmov 1983009808   ;;  %vm942_vm3 = vcmask 1043459   ;;  %s260_s9 = sand.u32 1, %s2912_s16   ;;  %s2761_s14 = sshll.u32 %s2920_s18, 10 }
  0x1a   : > { %vm1578_vm0 = vcmp.eq.s32.totalorder %v3020_v1, 0  ;;  %vm1580_vm1 = vcmp.eq.s32.totalorder %v1577_v2, 0  ;;  %v3025_v5 = vsub.s32 0, %v3020_v1  ;;  %v3028_v6 = vsub.s32 1, %v3020_v1  ;;  %s2759_s29 = sshll.u32 %s265_s28, 8  ;;  %s2675_s10 = sshll.u32 %s260_s9, 6 }
  0x1b   : > { %v1579_v8 = vsel %vm1578_vm0, 0.5, %v2931_v7  ;;  %v1581_v9 = vsel %vm1580_vm1, 0.5, %v2931_v7  ;;  %v1613_v10 = vsub.s32 4, %v3020_v1  ;;  %v1620_v11 = vsub.s32 5, %v3020_v1  ;;  %s3038_s6 = scalar_lea.vmem %s4101_s0, %s2759_s29  ;;  %s262_s13 = scalar_lea.vmem [#allocation2], %s2675_s10 }
  0x1c   : > { %v1582_v12 = vmul.f32 %v1581_v9, %v1579_v8  ;;  %v1599_v13 = vsub.s32 2, %v3020_v1  ;;  %v1627_v14 = vsub.s32 6, %v3020_v1  ;;  %v1606_v15 = vsub.s32 3, %v3020_v1  ;;  %v292_v22 = vld [vmem:[%s3038_s6] sm:$0xff]  ;;  %v293_v26 = vld [vmem:[%s3038_s6 + $0x8] sm:$0xff]  ;;  %v294_v27 = vld [vmem:[%s3038_s6 + $0x10] sm:$0xff]  ;;  %s4047_s25 = scalar_lea.hbm %s4105_s4, %s2761_s14 }
  0x1d   : > { %v1634_v16 = vsub.s32 7, %v3020_v1  ;;  %v295_v28 = vld [vmem:[%s3038_s6 + $0x18] sm:$0xff]  ;;  %v296_v33 = vld [vmem:[%s3038_s6 + $0x20] sm:$0xff]  ;;  %v297_v34 = vld [vmem:[%s3038_s6 + $0x28] sm:$0xff]  ;;  %v1656_v37 = vunpack.c.0.s8 %v1655_v19  ;;  %v1663_v38 = vunpack.c.0.s8 %v1662_v21  ;;  %v3062_v44 = vsub.s32 %v1649_v17, %v3020_v1  ;;  %s2567_s20 = sshll.u32 %s262_s13, 4  ;;  %s4055_s18 = scalar_lea.sflag [#allocation3], %s260_s9  ;;  %s4049_s20 = int_to_ptr.vmem [resolvable:$true] %s2567_s20 }
  0x1e   : > { %v1586_v23 = vrot.slane %v1582_v12, %v3025_v5  ;;  %v1593_v24 = vrot.slane %v1582_v12, %v3028_v6  ;;  %v1614_v25 = vrot.slane %v1582_v12, %v1613_v10  ;;  %v1621_v29 = vrot.slane %v1582_v12, %v1620_v11  ;;  %v3052_v35 = vld [vmem:[%s3038_s6 + $0x30] sm:$0xff]  ;;  %v3057_v41 = vld [vmem:[%s3038_s6 + $0x38] sm:$0xff]  ;;  %v308_v42 = vld [vmem:[%s3038_s6 + $0x80] sm:$0xff]  ;;  %s2850_s28 = scalar_lea.vmem %s4049_s20, 1024  ;;  %s2936_s29 = smov [#allocation2]  }
  0x1f   : > { %v1600_v30 = vrot.slane %v1582_v12, %v1599_v13  ;;  %v1628_v31 = vrot.slane %v1582_v12, %v1627_v14  ;;  %v3047_v32 = vrot.slane %v1582_v12, %v1606_v15  ;;  %v3054_v36 = vrot.slane %v1582_v12, %v1634_v16  ;;  %v309_v43 = vld [vmem:[%s3038_s6 + $0x88] sm:$0xff]  ;;  %v3065_v47 = vld [vmem:[%s3038_s6 + $0x70] sm:$0xff]  ;;  %v311_v49 = vld [vmem:[%s3038_s6 + $0x98] sm:$0xff]  ;;  %p2851_p12 = scmp.ne.s32.totalorder %s4049_s20, %s2850_s28  ;;  %s2854_s30 = sshll.u32 %s2936_s29, 4  ;;  %s2855_s30 = int_to_ptr.vmem [resolvable:$false] %s2854_s30 }
  0x20   : > { %1588 = vbcast.lane.b32.xlu0 %v1586_v23, 256  ;;  %1595 = vbcast.lane.b32.xlu1 %v1593_v24, 256  ;;  %v332_v45 = vadd.f32 %v294_v27, %v292_v22  ;;  %v333_v46 = vadd.f32 %v295_v28, %v293_v26  ;;  %v310_v48 = vld [vmem:[%s3038_s6 + $0x90] sm:$0xff]  ;;  %v312_v50 = vld [vmem:[%s3038_s6 + $0xa0] sm:$0xff]  ;;  %v3071_v51 = vsub.s32 %v1656_v37, %v3020_v1  ;;  %v1670_v53 = vunpack.c.0.s8 %v1669_v40  ;;  %v313_v56 = vld [vmem:[%s3038_s6 + $0xa8] sm:$0xff]  ;;  %s2856_s5 = scalar_lea.vmem %s2855_s30, 2048  ;;  %p2857_p1 = scmp.lt.s32.totalorder %s4049_s20, %s2855_s30 }
  0x21   : > { %v3074_v52 = vsub.s32 %v1663_v38, %v3020_v1  ;;  %v382_v55 = vunpack.c.l.s4 %v2935_v54  ;;  %v3078_v57 = vld [vmem:[%s3038_s6 + $0xb0] sm:$0xff]  ;;  %v3081_v58 = vld [vmem:[%s3038_s6 + $0xb8] sm:$0xff]  ;;  %v334_v61 = vadd.f32 %v3052_v35, %v296_v33  ;;  %v335_v62 = vadd.f32 %v3057_v41, %v297_v34  ;;  %v300_v0 = vld [vmem:[%s3038_s6 + $0x40] sm:$0xff]  ;;  %p2852_p13 = pnand %p2851_p12, %p3004_p4  ;;  %p2858_p2 = scmp.lt.s32.totalorder %s2856_s5, %s2850_s28 }
  0x22   : > { %v380_v59 = vcombine.high %v332_v45, %v332_v45  ;;  %v397_v60 = vcombine.high %v333_v46, %v333_v46  ;;  %v3086_v63 = vld [vmem:[%s3038_s6 + $0x78] sm:$0xff]  ;;  %v3090_v2 = vld [vmem:[%s3038_s6 + $0x50] sm:$0xff]  ;;  %v3093_v3 = vsub.s32 %v1670_v53, %v3020_v1  ;;  %v340_v7 = vadd.f32 %v310_v48, %v308_v42 }
  0x23   : > { %v383_v4 = vunpack.c.0.s8 %v382_v55  ;;  %v341_v8 = vadd.f32 %v311_v49, %v309_v43  ;;  %vm944_vm4 = vcmask 1044484   ;;  %v350_v9 = vadd.f32 %v334_v61, %v294_v27  ;;  %p2853_p0 = pneg %p2852_p13  ;;  %p2859_p3 = por %p2858_p2, %p2857_p1 }
  0x24   : > { %1616 = vbcast.lane.b32.xlu0 %v1614_v25, 256  ;;  %1623 = vbcast.lane.b32.xlu1 %v1621_v29, 256  ;;  %v351_v10 = vadd.f32 %v335_v62, %v295_v28  ;;  %v342_v11 = vadd.f32 %v3078_v57, %v312_v50  ;;  %v343_v12 = vadd.f32 %v3081_v58, %v313_v56  ;;  %vm946_vm5 = vcmask 1045509  }
  0x25   : > { %v3098_v13 = vsub.s32 %v383_v4, %v3020_v1  ;;  %v3101_v14 = vadd.f32 %v340_v7, %v3065_v47  ;;  %v3104_v15 = vadd.f32 %v341_v8, %v3086_v63  ;;  %v3107_v16 = vadd.f32 %v3090_v2, %v300_v0  ;;  %p2860_p5 = pnand %p2859_p3, %p2853_p0 }
  0x26   : > { %vm948_vm6 = vcmask 1046534   ;;  %v414_v17 = vcombine.high %v350_v9, %v350_v9  ;;  %v431_v18 = vcombine.high %v351_v10, %v351_v10  ;;  %v3109_v19 = vadd.f32 %v342_v11, %v310_v48 }
  0x27   : > { %v3111_v20 = vadd.f32 %v343_v12, %v311_v49  ;;  %vm950_vm7 = vcmask 1047559   ;;  %v387_v1 = vrot.slane %v332_v45, %v3098_v13  ;;  %v394_v21 = vrot.slane %v380_v59, %v3098_v13 }
  0x28   : > { %1602 = vbcast.lane.b32.xlu0 %v1600_v30, 256  ;;  %1630 = vbcast.lane.b32.xlu1 %v1628_v31, 256  ;;  %v404_v22 = vrot.slane %v333_v46, %v3098_v13  ;;  %vm1002_vm8 = vcmask 1040384   ;;  %v3117_v23 = vrot.slane %v397_v60, %v3098_v13  ;;  %v3120_v24 = vrot.slane %v350_v9, %v3098_v13 }
  0x29   : > { %v3123_v25 = vrot.slane %v414_v17, %v3098_v13  ;;  %v3126_v26 = vrot.slane %v351_v10, %v3098_v13  ;;  %v395_v27 = vcombine.high %v387_v1, %v387_v1  ;;  %v396_v28 = vcombine.high %v394_v21, %v394_v21 }
  0x2a   : > { %v412_v29 = vcombine.high %v404_v22, %v404_v22  ;;  %v719_v30 = vrot.slane %v387_v1, %v3028_v6  ;;  %v727_v31 = vrot.slane %v394_v21, %v3028_v6  ;;  %v735_v33 = vrot.slane %v404_v22, %v3028_v6 }
  0x2b   : > { %v743_v34 = vrot.slane %v3117_v23, %v3028_v6  ;;  %v2680_v37 = vrot.slane %v387_v1, 9  ;;  %v723_v38 = vrot.slane %v395_v27, %v3028_v6  ;;  %v731_v39 = vrot.slane %v396_v28, %v3028_v6 }
  0x2c   : > { %1609 = vbcast.lane.b32.xlu0 %v3047_v32, 256  ;;  %1637 = vbcast.lane.b32.xlu1 %v3054_v36, 256  ;;  %v739_v40 = vrot.slane %v412_v29, %v3028_v6  ;;  %v2681_v42 = vrot.slane %v395_v27, 9  ;;  %v2682_v43 = vrot.slane %v394_v21, 9  ;;  %v2683_v45 = vrot.slane %v396_v28, 9 }
  0x2d   : > { %v2684_v46 = vrot.slane %v404_v22, 9  ;;  %v2685_v48 = vrot.slane %v412_v29, 9  ;;  %v941_v49 = vsel %vm940_vm2, %v723_v38, %v719_v30  ;;  %v2686_v50 = vrot.slane %v3117_v23, 9 }
  0x2e   : > { %v1203_v53 = vadd.f32 %v2680_v37, %v387_v1  ;;  %v1204_v54 = vadd.f32 %v2681_v42, %v395_v27  ;;  %v943_v32 = vsel %vm942_vm3, %v727_v31, %v941_v49  ;;  %v1205_v36 = vadd.f32 %v2682_v43, %v394_v21 }
  0x2f   : > { %v1206_v55 = vadd.f32 %v2683_v45, %v396_v28  ;;  %v1207_v56 = vadd.f32 %v2684_v46, %v404_v22  ;;  %v945_v59 = vsel %vm944_vm4, %v731_v39, %v943_v32  ;;  %v1208_v60 = vadd.f32 %v2685_v48, %v412_v29 }
  0x30   : > { %v1209_v61 = vadd.f32 %v2686_v50, %v3117_v23  ;;  %v429_v62 = vcombine.high %v3120_v24, %v3120_v24  ;;  %v947_v0 = vsel %vm946_vm5, %v735_v33, %v945_v59  ;;  %v430_v4 = vcombine.high %v3123_v25, %v3123_v25 }
  0x31   : > { %v445_v7 = vrot.slane %v431_v18, %v3098_v13  ;;  %v446_v8 = vcombine.high %v3126_v26, %v3126_v26  ;;  %v949_v9 = vsel %vm948_vm6, %v739_v40, %v947_v0  ;;  %v747_v10 = vrot.slane %v3120_v24, %v3028_v6 }
  0x32   : > { %v751_v11 = vrot.slane %v429_v62, %v3028_v6  ;;  %v755_v12 = vrot.slane %v3123_v25, %v3028_v6  ;;  %v951_v17 = vsel %vm950_vm7, %v743_v34, %v949_v9  ;;  %v759_v21 = vrot.slane %v430_v4, %v3028_v6 }
  0x33   : > { %v447_v1 = vcombine.high %v445_v7, %v445_v7  ;;  %v763_v18 = vrot.slane %v3126_v26, %v3028_v6  ;;  %v1003_v22 = vsel %vm1002_vm8, 0.0, %v951_v17  ;;  %v767_v27 = vrot.slane %v446_v8, %v3028_v6 }
  0x34   : > { %v771_v28 = vrot.slane %v445_v7, %v3028_v6  ;;  %v952_v29 = vsel %vm940_vm2, %v751_v11, %v747_v10  ;;  %v1275_v30 = vcombine.high %v1003_v22, %v1003_v22  ;;  %v1282_v31 = vrot.slane %v1003_v22, %v3098_v13 }
  0x35   : > { %v953_v33 = vsel %vm942_vm3, %v755_v12, %v952_v29  ;;  %v2688_v34 = vrot.slane %v3120_v24, 9  ;;  %v2689_v38 = vrot.slane %v429_v62, 9  ;;  %v2690_v39 = vrot.slane %v3123_v25, 9 }
  0x36   : > { %v954_v37 = vsel %vm944_vm4, %v759_v21, %v953_v33  ;;  %v2691_v40 = vrot.slane %v430_v4, 9  ;;  %v1289_v42 = vrot.slane %v1275_v30, %v3098_v13  ;;  %v1290_v43 = vcombine.high %v1282_v31, %v1282_v31 }
  0x37   : > { %v1411_v45 = vrot.slane %v1282_v31, 1  ;;  %v3171_v46 = vadd.f32 %v1282_v31, %v1203_v53  ;;  %v955_v48 = vsel %vm946_vm5, %v763_v18, %v954_v37  ;;  %v2692_v49 = vrot.slane %v3126_v26, 9 }
  0x38   : > { %v2693_v50 = vrot.slane %v446_v8, 9  ;;  %v2694_v32 = vrot.slane %v445_v7, 9  ;;  %v3175_v59 = vcombine.high %v1289_v42, %v1289_v42  ;;  %v1412_v0 = vrot.slane %v1290_v43, 1 }
  0x39   : > { %v1413_v9 = vrot.slane %v1289_v42, 1  ;;  %v3177_v10 = vadd.f32 %v1411_v45, %v1204_v54  ;;  %v3179_v11 = vadd.f32 %v1290_v43, %v1205_v36  ;;  %v3181_v12 = vadd.f32 %v1289_v42, %v1207_v56 }
  0x3a   : > { %v956_v17 = vsel %vm948_vm6, %v767_v27, %v955_v48  ;;  %v2695_v53 = vrot.slane %v447_v1, 9  ;;  %v3184_v21 = vadd.f32 %v1412_v0, %v1206_v55  ;;  %v3189_v22 = vadd.f32 %v3175_v59, %v1209_v61 }
  0x3b   : > { %v3186_v18 = vadd.f32 %v1413_v9, %v1208_v60  ;;  %v957_v29 = vsel %vm950_vm7, %v771_v28, %v956_v17  ;;  %v1211_v54 = vadd.f32 %v2688_v34, %v3120_v24  ;;  %v1212_v36 = vadd.f32 %v2689_v38, %v429_v62 }
  0x3c   : > { %v1004_v30 = vsel %vm1002_vm8, 0.0, %v957_v29  ;;  %v1213_v56 = vadd.f32 %v2690_v39, %v3123_v25  ;;  %v1214_v31 = vadd.f32 %v2691_v40, %v430_v4  ;;  %v1215_v27 = vadd.f32 %v2692_v49, %v3126_v26 }
  0x3d   : > { %v1216_v33 = vadd.f32 %v2693_v50, %v446_v8  ;;  %v1217_v55 = vadd.f32 %v2694_v32, %v445_v7  ;;  %v1218_v37 = vadd.f32 %v2695_v53, %v447_v1  ;;  %v1292_v60 = vcombine.high %v1004_v30, %v1004_v30 }
  0x3e   : > { %v1299_v42 = vrot.slane %v1004_v30, %v3098_v13  ;;  %v516_v61 = vcombine.high %v3101_v14, %v3101_v14  ;;  %v523_v28 = vrot.slane %v3101_v14, %v3098_v13  ;;  %v533_v24 = vcombine.high %v3104_v15, %v3104_v15 }
  0x3f   : > { %v540_v25 = vrot.slane %v3104_v15, %v3098_v13  ;;  %v550_v26 = vcombine.high %v3109_v19, %v3109_v19  ;;  %v1306_v62 = vrot.slane %v1292_v60, %v3098_v13  ;;  %vm2433_vm9 = vcmask 1043456  }
  0x40   : > { %v1307_v4 = vcombine.high %v1299_v42, %v1299_v42  ;;  %v1415_v7 = vrot.slane %v1299_v42, 1  ;;  %v3208_v8 = vadd.f32 %v1299_v42, %v1211_v54  ;;  %v530_v1 = vrot.slane %v516_v61, %v3098_v13 }
  0x41   : > { %v531_v34 = vcombine.high %v523_v28, %v523_v28  ;;  %v3212_v14 = vrot.slane %v533_v24, %v3098_v13  ;;  %v548_v38 = vcombine.high %v540_v25, %v540_v25  ;;  %v1308_v39 = vcombine.high %v1306_v62, %v1306_v62 }
  0x42   : > { %v1416_v40 = vrot.slane %v1307_v4, 1  ;;  %v1417_v43 = vrot.slane %v1306_v62, 1  ;;  %v3214_v15 = vadd.f32 %v1415_v7, %v1212_v36  ;;  %v3216_v45 = vadd.f32 %v1307_v4, %v1213_v56 }
  0x43   : > { %4129 = vst [vmem:[#allocation5_spill] sm:$0xff] %v3212_v14  ;;  %v3218_v48 = vadd.f32 %v1306_v62, %v1215_v27  ;;  %v532_v49 = vcombine.high %v530_v1, %v530_v1  ;;  %v831_v50 = vrot.slane %v523_v28, %v3028_v6  ;;  %v1418_v32 = vrot.slane %v1308_v39, 1 }
  0x44   : > { %v3221_v0 = vadd.f32 %v1416_v40, %v1214_v31  ;;  %v3223_v9 = vadd.f32 %v1417_v43, %v1216_v33  ;;  %v3225_v17 = vadd.f32 %v1308_v39, %v1217_v55  ;;  %v835_v53 = vrot.slane %v531_v34, %v3028_v6  ;;  %v301_v43 = vld [vmem:[%s3038_s6 + $0x48] sm:$0xff] }
  0x45   : > { %4130 = vst [vmem:[#allocation6_spill] sm:$0xff] %v3218_v48  ;;  %v839_v29 = vrot.slane %v530_v1, %v3028_v6  ;;  %v843_v30 = vrot.slane %v532_v49, %v3028_v6  ;;  %v847_v54 = vrot.slane %v540_v25, %v3028_v6  ;;  %v3231_v36 = vadd.f32 %v1418_v32, %v1218_v37  ;;  %v3242_v32 = vld [vmem:[%s3038_s6 + $0x58] sm:$0xff] }
  0x46   : > { %4131 = vst [vmem:[#allocation7_spill] sm:$0xff] %v3221_v0  ;;  %4132 = vst [vmem:[#allocation8_spill] sm:$0xff] %v3223_v9  ;;  %v851_v56 = vrot.slane %v548_v38, %v3028_v6  ;;  %v855_v31 = vrot.slane %v3212_v14, %v3028_v6  ;;  %v2712_v27 = vrot.slane %v523_v28, 9  ;;  %v970_v33 = vsel %vm940_vm2, %v835_v53, %v831_v50 }
  0x47   : > { %4133 = vst [vmem:[#allocation9_spill] sm:$0xff] %v3225_v17  ;;  %4134 = vst [vmem:[#allocation10_spill] sm:$0xff] %v3231_v36  ;;  %v2713_v55 = vrot.slane %v531_v34, 9  ;;  %v2714_v60 = vrot.slane %v530_v1, 9  ;;  %v2715_v42 = vrot.slane %v532_v49, 9  ;;  %v971_v61 = vsel %vm942_vm3, %v839_v29, %v970_v33 }
  0x48   : > { %v2716_v24 = vrot.slane %v540_v25, 9  ;;  %v2717_v62 = vrot.slane %v548_v38, 9  ;;  %v2718_v37 = vrot.slane %v3212_v14, 9  ;;  %v972_v4 = vsel %vm944_vm4, %v843_v30, %v971_v61 }
  0x49   : > { %v1235_v7 = vadd.f32 %v2712_v27, %v523_v28  ;;  %v1236_v39 = vadd.f32 %v2713_v55, %v531_v34  ;;  %v1237_v40 = vadd.f32 %v2714_v60, %v530_v1  ;;  %v973_v36 = vsel %vm946_vm5, %v847_v54, %v972_v4 }
  0x4a   : > { %v1238_v50 = vadd.f32 %v2715_v42, %v532_v49  ;;  %v1239_v53 = vadd.f32 %v2716_v24, %v540_v25  ;;  %v1240_v17 = vadd.f32 %v2717_v62, %v548_v38  ;;  %v974_v9 = vsel %vm948_vm6, %v851_v56, %v973_v36 }
  0x4b   : > { %v1241_v29 = vadd.f32 %v2718_v37, %v3212_v14  ;;  %v557_v33 = vrot.slane %v3109_v19, %v3098_v13  ;;  %v564_v30 = vrot.slane %v550_v26, %v3098_v13  ;;  %v975_v28 = vsel %vm950_vm7, %v855_v31, %v974_v9 }
  0x4c   : > { %v567_v1 = vcombine.high %v3111_v20, %v3111_v20  ;;  %v574_v34 = vrot.slane %v3111_v20, %v3098_v13  ;;  %v337_v25 = vadd.f32 %v3242_v32, %v301_v43  ;;  %v1007_v38 = vsel %vm1002_vm8, 0.0, %v975_v28 }
  0x4d   : > { %v565_v49 = vcombine.high %v557_v33, %v557_v33  ;;  %v566_v54 = vcombine.high %v564_v30, %v564_v30  ;;  %v859_v36 = vrot.slane %v557_v33, %v3028_v6  ;;  %v1343_v56 = vcombine.high %v1007_v38, %v1007_v38 }
  0x4e   : > { %v1350_v19 = vrot.slane %v1007_v38, %v3098_v13  ;;  %v581_v26 = vrot.slane %v567_v1, %v3098_v13  ;;  %v582_v9 = vcombine.high %v574_v34, %v574_v34  ;;  %v867_v27 = vrot.slane %v564_v30, %v3028_v6 }
  0x4f   : > { %v863_v31 = vrot.slane %v565_v49, %v3028_v6  ;;  %v871_v20 = vrot.slane %v566_v54, %v3028_v6  ;;  %v875_v55 = vrot.slane %v574_v34, %v3028_v6  ;;  %v1357_v60 = vrot.slane %v1343_v56, %v3098_v13 }
  0x50   : > { %v1358_v42 = vcombine.high %v1350_v19, %v1350_v19  ;;  %v1427_v61 = vrot.slane %v1350_v19, 1  ;;  %v3265_v24 = vadd.f32 %v1350_v19, %v1235_v7  ;;  %v583_v62 = vcombine.high %v581_v26, %v581_v26 }
  0x51   : > { %v879_v37 = vrot.slane %v582_v9, %v3028_v6  ;;  %v883_v4 = vrot.slane %v581_v26, %v3028_v6  ;;  %v976_v43 = vsel %vm940_vm2, %v863_v31, %v859_v36  ;;  %v3270_v28 = vcombine.high %v1357_v60, %v1357_v60 }
  0x52   : > { %4135 = vst [vmem:[#allocation11_spill] sm:$0xff] %v3265_v24  ;;  %v1428_v1 = vrot.slane %v1358_v42, 1  ;;  %v1429_v38 = vrot.slane %v1357_v60, 1  ;;  %v3272_v14 = vadd.f32 %v1427_v61, %v1236_v39  ;;  %v3274_v48 = vadd.f32 %v1358_v42, %v1237_v40 }
  0x53   : > { %4136 = vst [vmem:[#allocation12_spill] sm:$0xff] %v3270_v28  ;;  %v3276_v56 = vadd.f32 %v1357_v60, %v1239_v53  ;;  %v977_v7 = vsel %vm942_vm3, %v867_v27, %v976_v43  ;;  %v2720_v19 = vrot.slane %v557_v33, 9  ;;  %v3284_v36 = vadd.f32 %v3270_v28, %v1241_v29 }
  0x54   : > { %4137 = vst [vmem:[#allocation13_spill] sm:$0xff] %v3272_v14  ;;  %v3279_v24 = vadd.f32 %v1428_v1, %v1238_v50  ;;  %v3281_v0 = vadd.f32 %v1429_v38, %v1240_v17  ;;  %v978_v39 = vsel %vm944_vm4, %v871_v20, %v977_v7  ;;  %v2721_v31 = vrot.slane %v565_v49, 9  ;;  %v316_v38 = vld [vmem:[%s3038_s6 + $0xc0] sm:$0xff]  ;;  %v317_v20 = vld [vmem:[%s3038_s6 + $0xc8] sm:$0xff]  ;;  %v3293_v7 = vld [vmem:[%s3038_s6 + $0xd0] sm:$0xff] }
  0x55   : > { %4138 = vst [vmem:[#allocation14_spill] sm:$0xff] %v3276_v56  ;;  %4141 = vst [vmem:[#allocation17_spill] sm:$0xff] %v3284_v36  ;;  %v979_v40 = vsel %vm946_vm5, %v875_v55, %v978_v39  ;;  %v2722_v53 = vrot.slane %v564_v30, 9  ;;  %v2723_v60 = vrot.slane %v566_v54, 9  ;;  %v2724_v50 = vrot.slane %v574_v34, 9 }
  0x56   : > { %4139 = vst [vmem:[#allocation15_spill] sm:$0xff] %v3279_v24  ;;  %4140 = vst [vmem:[#allocation16_spill] sm:$0xff] %v3281_v0  ;;  %v980_v27 = vsel %vm948_vm6, %v879_v37, %v979_v40  ;;  %v2725_v17 = vrot.slane %v582_v9, 9  ;;  %v2726_v42 = vrot.slane %v581_v26, 9  ;;  %v2727_v29 = vrot.slane %v583_v62, 9  ;;  %v3297_v37 = vld [vmem:[%s3038_s6 + $0xd8] sm:$0xff] }
  0x57   : > { %v981_v61 = vsel %vm950_vm7, %v883_v4, %v980_v27  ;;  %v1243_v43 = vadd.f32 %v2720_v19, %v557_v33  ;;  %v1244_v1 = vadd.f32 %v2721_v31, %v565_v49  ;;  %v1245_v39 = vadd.f32 %v2722_v53, %v564_v30  ;;  %v304_v40 = vld [vmem:[%s3038_s6 + $0x60] sm:$0xff]  ;;  %v305_v24 = vld [vmem:[%s3038_s6 + $0x68] sm:$0xff] }
  0x58   : > { %v1008_v55 = vsel %vm1002_vm8, 0.0, %v981_v61  ;;  %v1246_v28 = vadd.f32 %v2723_v60, %v566_v54  ;;  %v1247_v0 = vadd.f32 %v2724_v50, %v574_v34  ;;  %v1248_v36 = vadd.f32 %v2725_v17, %v582_v9 }
  0x59   : > { %v1249_v56 = vadd.f32 %v2726_v42, %v581_v26  ;;  %v1250_v14 = vadd.f32 %v2727_v29, %v583_v62  ;;  %v1360_v4 = vcombine.high %v1008_v55, %v1008_v55  ;;  %v1367_v33 = vrot.slane %v1008_v55, %v3098_v13 }
  0x5a   : > { %v352_v49 = vadd.f32 %v3107_v16, %v3052_v35  ;;  %v353_v19 = vadd.f32 %v337_v25, %v3057_v41  ;;  %v344_v31 = vadd.f32 %v3293_v7, %v316_v38  ;;  %v345_v34 = vadd.f32 %v3297_v37, %v317_v20 }
  0x5b   : > { %v1374_v30 = vrot.slane %v1360_v4, %v3098_v13  ;;  %v338_v54 = vadd.f32 %v3065_v47, %v304_v40  ;;  %v339_v9 = vadd.f32 %v3086_v63, %v305_v24  ;;  %v1375_v26 = vcombine.high %v1367_v33, %v1367_v33 }
  0x5c   : > { %v1431_v62 = vrot.slane %v1367_v33, 1  ;;  %v3310_v53 = vadd.f32 %v1367_v33, %v1243_v43  ;;  %v448_v60 = vcombine.high %v352_v49, %v352_v49  ;;  %v455_v41 = vrot.slane %v352_v49, %v3098_v13 }
  0x5d   : > { %v1376_v27 = vcombine.high %v1374_v30, %v1374_v30  ;;  %v1433_v50 = vrot.slane %v1374_v30, 1  ;;  %v3312_v35 = vadd.f32 %v1374_v30, %v1247_v0  ;;  %v1432_v16 = vrot.slane %v1375_v26, 1 }
  0x5e   : > { %v3315_v25 = vadd.f32 %v1431_v62, %v1244_v1  ;;  %v3317_v17 = vadd.f32 %v1375_v26, %v1245_v39  ;;  %v462_v47 = vrot.slane %v448_v60, %v3098_v13  ;;  %v463_v61 = vcombine.high %v455_v41, %v455_v41 }
  0x5f   : > { %4142 = vst [vmem:[#allocation18_spill] sm:$0xff] %v3312_v35  ;;  %v1434_v42 = vrot.slane %v1376_v27, 1  ;;  %v3320_v63 = vadd.f32 %v1433_v50, %v1248_v36  ;;  %v3322_v24 = vadd.f32 %v1376_v27, %v1249_v56  ;;  %v3324_v29 = vadd.f32 %v1432_v16, %v1246_v28 }
  0x60   : > { %4143 = vst [vmem:[#allocation19_spill] sm:$0xff] %v3315_v25  ;;  %4144 = vst [vmem:[#allocation20_spill] sm:$0xff] %v3317_v17  ;;  %v464_v43 = vcombine.high %v462_v47, %v462_v47  ;;  %v465_v0 = vcombine.high %v353_v19, %v353_v19  ;;  %v472_v38 = vrot.slane %v353_v19, %v3098_v13  ;;  %v2696_v33 = vrot.slane %v455_v41, 9 }
  0x61   : > { %4145 = vst [vmem:[#allocation21_spill] sm:$0xff] %v3320_v63  ;;  %4146 = vst [vmem:[#allocation22_spill] sm:$0xff] %v3322_v24  ;;  %v3327_v20 = vadd.f32 %v1434_v42, %v1250_v14  ;;  %v775_v1 = vrot.slane %v455_v41, %v3028_v6  ;;  %v779_v55 = vrot.slane %v463_v61, %v3028_v6  ;;  %v2697_v49 = vrot.slane %v463_v61, 9 }
  0x62   : > { %4147 = vst [vmem:[#allocation23_spill] sm:$0xff] %v3324_v29  ;;  %v783_v39 = vrot.slane %v462_v47, %v3028_v6  ;;  %v479_v36 = vrot.slane %v465_v0, %v3098_v13  ;;  %v480_v40 = vcombine.high %v472_v38, %v472_v38  ;;  %v787_v56 = vrot.slane %v464_v43, %v3028_v6 }
  0x63   : > { %4148 = vst [vmem:[#allocation24_spill] sm:$0xff] %v3327_v20  ;;  %v791_v28 = vrot.slane %v472_v38, %v3028_v6  ;;  %v958_v4 = vsel %vm940_vm2, %v779_v55, %v775_v1  ;;  %v2698_v19 = vrot.slane %v462_v47, 9  ;;  %v2699_v27 = vrot.slane %v464_v43, 9 }
  0x64   : > { %v481_v14 = vcombine.high %v479_v36, %v479_v36  ;;  %v795_v30 = vrot.slane %v480_v40, %v3028_v6  ;;  %v799_v26 = vrot.slane %v479_v36, %v3028_v6  ;;  %v959_v62 = vsel %vm942_vm3, %v783_v39, %v958_v4 }
  0x65   : > { %v960_v60 = vsel %vm944_vm4, %v787_v56, %v959_v62  ;;  %v2700_v50 = vrot.slane %v472_v38, 9  ;;  %v2701_v16 = vrot.slane %v480_v40, 9  ;;  %v2702_v0 = vrot.slane %v479_v36, 9 }
  0x66   : > { %v961_v42 = vsel %vm946_vm5, %v791_v28, %v960_v60  ;;  %v2703_v20 = vrot.slane %v481_v14, 9  ;;  %v1219_v1 = vadd.f32 %v2696_v33, %v455_v41  ;;  %v1220_v63 = vadd.f32 %v2697_v49, %v463_v61 }
  0x67   : > { %v962_v55 = vsel %vm948_vm6, %v795_v30, %v961_v42  ;;  %v1221_v24 = vadd.f32 %v2698_v19, %v462_v47  ;;  %v1222_v29 = vadd.f32 %v2699_v27, %v464_v43  ;;  %v1223_v35 = vadd.f32 %v2700_v50, %v472_v38 }
  0x68   : > { %v963_v25 = vsel %vm950_vm7, %v799_v26, %v962_v55  ;;  %v1224_v17 = vadd.f32 %v2701_v16, %v480_v40  ;;  %v1225_v39 = vadd.f32 %v2702_v0, %v479_v36  ;;  %v1226_v4 = vadd.f32 %v2703_v20, %v481_v14 }
  0x69   : > { %v1005_v56 = vsel %vm1002_vm8, 0.0, %v963_v25  ;;  %v360_v62 = vadd.f32 %v344_v31, %v3078_v57  ;;  %v361_v28 = vadd.f32 %v345_v34, %v3081_v58  ;;  %v3348_v33 = vadd.f32 %v338_v54, %v3090_v2 }
  0x6a   : > { %v1309_v60 = vcombine.high %v1005_v56, %v1005_v56  ;;  %v1316_v41 = vrot.slane %v1005_v56, %v3098_v13  ;;  %v3351_v47 = vadd.f32 %v339_v9, %v3242_v32  ;;  %vm2359_vm10 = vcmask 1041409  }
  0x6b   : > { %v584_v61 = vcombine.high %v360_v62, %v360_v62  ;;  %v591_v43 = vrot.slane %v360_v62, %v3098_v13  ;;  %v601_v38 = vcombine.high %v361_v28, %v361_v28  ;;  %v608_v25 = vrot.slane %v361_v28, %v3098_v13 }
  0x6c   : > { %v1323_v20 = vrot.slane %v1309_v60, %v3098_v13  ;;  %v1324_v57 = vcombine.high %v1316_v41, %v1316_v41  ;;  %v1419_v31 = vrot.slane %v1316_v41, 1  ;;  %v3356_v58 = vadd.f32 %v1316_v41, %v1219_v1 }
  0x6d   : > { %v598_v34 = vrot.slane %v584_v61, %v3098_v13  ;;  %v599_v36 = vcombine.high %v591_v43, %v591_v43  ;;  %v615_v2 = vrot.slane %v601_v38, %v3098_v13  ;;  %v616_v54 = vcombine.high %v608_v25, %v608_v25 }
  0x6e   : > { %v1325_v32 = vcombine.high %v1323_v20, %v1323_v20  ;;  %v1420_v9 = vrot.slane %v1324_v57, 1  ;;  %v1421_v40 = vrot.slane %v1323_v20, 1  ;;  %v3360_v49 = vadd.f32 %v1419_v31, %v1220_v63 }
  0x6f   : > { %v3362_v19 = vadd.f32 %v1324_v57, %v1221_v24  ;;  %v3364_v14 = vadd.f32 %v1323_v20, %v1223_v35  ;;  %v600_v30 = vcombine.high %v598_v34, %v598_v34  ;;  %v617_v26 = vcombine.high %v615_v2, %v615_v2 }
  0x70   : > { %v1422_v27 = vrot.slane %v1325_v32, 1  ;;  %v3366_v50 = vadd.f32 %v1420_v9, %v1222_v29  ;;  %v3368_v16 = vadd.f32 %v1421_v40, %v1224_v17  ;;  %v3370_v42 = vadd.f32 %v1325_v32, %v1225_v39 }
  0x71   : > { %v887_v0 = vrot.slane %v591_v43, %v3028_v6  ;;  %v891_v1 = vrot.slane %v599_v36, %v3028_v6  ;;  %v895_v63 = vrot.slane %v598_v34, %v3028_v6  ;;  %v899_v24 = vrot.slane %v600_v30, %v3028_v6 }
  0x72   : > { %4149 = vst [vmem:[#allocation25_spill] sm:$0xff] %v3366_v50  ;;  %4150 = vst [vmem:[#allocation26_spill] sm:$0xff] %v3368_v16  ;;  %v3376_v55 = vadd.f32 %v1422_v27, %v1226_v4  ;;  %v903_v35 = vrot.slane %v608_v25, %v3028_v6  ;;  %v907_v56 = vrot.slane %v616_v54, %v3028_v6  ;;  %v2728_v39 = vrot.slane %v591_v43, 9 }
  0x73   : > { %4151 = vst [vmem:[#allocation27_spill] sm:$0xff] %v3370_v42  ;;  %v911_v29 = vrot.slane %v615_v2, %v3028_v6  ;;  %v982_v17 = vsel %vm940_vm2, %v891_v1, %v887_v0  ;;  %v2729_v62 = vrot.slane %v599_v36, 9  ;;  %v2730_v28 = vrot.slane %v598_v34, 9  ;;  %v320_v0 = vld [vmem:[%s3038_s6 + $0xe0] sm:$0xff]  ;;  %v322_v1 = vld [vmem:[%s3038_s6 + $0xf0] sm:$0xff] }
  0x74   : > { %4152 = vst [vmem:[#allocation28_spill] sm:$0xff] %v3376_v55  ;;  %v983_v60 = vsel %vm942_vm3, %v895_v63, %v982_v17  ;;  %v2731_v41 = vrot.slane %v600_v30, 9  ;;  %v2732_v61 = vrot.slane %v608_v25, 9  ;;  %v2733_v38 = vrot.slane %v616_v54, 9 }
  0x75   : > { %v984_v4 = vsel %vm944_vm4, %v899_v24, %v983_v60  ;;  %v2734_v20 = vrot.slane %v615_v2, 9  ;;  %v2735_v57 = vrot.slane %v617_v26, 9  ;;  %v1251_v31 = vadd.f32 %v2728_v39, %v591_v43 }
  0x76   : > { %v985_v32 = vsel %vm946_vm5, %v903_v35, %v984_v4  ;;  %v1252_v9 = vadd.f32 %v2729_v62, %v599_v36  ;;  %v1253_v40 = vadd.f32 %v2730_v28, %v598_v34  ;;  %v1254_v27 = vadd.f32 %v2731_v41, %v600_v30 }
  0x77   : > { %v986_v55 = vsel %vm948_vm6, %v907_v56, %v985_v32  ;;  %v1255_v16 = vadd.f32 %v2732_v61, %v608_v25  ;;  %v1256_v50 = vadd.f32 %v2733_v38, %v616_v54  ;;  %v1257_v63 = vadd.f32 %v2734_v20, %v615_v2 }
  0x78   : > { %v987_v17 = vsel %vm950_vm7, %v911_v29, %v986_v55  ;;  %v1258_v42 = vadd.f32 %v2735_v57, %v617_v26  ;;  %v482_v24 = vcombine.high %v3348_v33, %v3348_v33  ;;  %v489_v43 = vrot.slane %v3348_v33, %v3098_v13 }
  0x79   : > { %v1009_v36 = vsel %vm1002_vm8, 0.0, %v987_v17  ;;  %v499_v34 = vcombine.high %v3351_v47, %v3351_v47  ;;  %v506_v30 = vrot.slane %v3351_v47, %v3098_v13  ;;  %v346_v25 = vadd.f32 %v322_v1, %v320_v0 }
  0x7a   : > { %v1377_v54 = vcombine.high %v1009_v36, %v1009_v36  ;;  %v1384_v2 = vrot.slane %v1009_v36, %v3098_v13  ;;  %v496_v26 = vrot.slane %v482_v24, %v3098_v13  ;;  %v497_v55 = vcombine.high %v489_v43, %v489_v43 }
  0x7b   : > { %v513_v35 = vrot.slane %v499_v34, %v3098_v13  ;;  %v514_v56 = vcombine.high %v506_v30, %v506_v30  ;;  %v803_v33 = vrot.slane %v489_v43, %v3028_v6  ;;  %v819_v29 = vrot.slane %v506_v30, %v3028_v6 }
  0x7c   : > { %v1391_v39 = vrot.slane %v1377_v54, %v3098_v13  ;;  %v1392_v62 = vcombine.high %v1384_v2, %v1384_v2  ;;  %v1435_v28 = vrot.slane %v1384_v2, 1  ;;  %v3404_v60 = vadd.f32 %v1384_v2, %v1251_v31 }
  0x7d   : > { %v498_v47 = vcombine.high %v496_v26, %v496_v26  ;;  %v515_v41 = vcombine.high %v513_v35, %v513_v35  ;;  %v807_v61 = vrot.slane %v497_v55, %v3028_v6  ;;  %v811_v38 = vrot.slane %v496_v26, %v3028_v6 }
  0x7e   : > { %v1393_v4 = vcombine.high %v1391_v39, %v1391_v39  ;;  %v1436_v20 = vrot.slane %v1392_v62, 1  ;;  %v1437_v57 = vrot.slane %v1391_v39, 1  ;;  %v3408_v32 = vadd.f32 %v1435_v28, %v1252_v9 }
  0x7f   : > { %v3410_v0 = vadd.f32 %v1392_v62, %v1253_v40  ;;  %v3412_v1 = vadd.f32 %v1391_v39, %v1255_v16  ;;  %v815_v17 = vrot.slane %v498_v47, %v3028_v6  ;;  %v823_v31 = vrot.slane %v514_v56, %v3028_v6 }
  0x80   : > { %4153 = vst [vmem:[#allocation29_spill] sm:$0xff] %v3408_v32  ;;  %v1438_v24 = vrot.slane %v1393_v4, 1  ;;  %v3416_v36 = vadd.f32 %v1436_v20, %v1254_v27  ;;  %v3418_v34 = vadd.f32 %v1437_v57, %v1256_v50  ;;  %v3420_v54 = vadd.f32 %v1393_v4, %v1257_v63 }
  0x81   : > { %4154 = vst [vmem:[#allocation30_spill] sm:$0xff] %v3412_v1  ;;  %v827_v2 = vrot.slane %v513_v35, %v3028_v6  ;;  %v964_v9 = vsel %vm940_vm2, %v807_v61, %v803_v33  ;;  %v2704_v40 = vrot.slane %v489_v43, 9  ;;  %v2705_v16 = vrot.slane %v497_v55, 9  ;;  %v321_v33 = vld [vmem:[%s3038_s6 + $0xe8] sm:$0xff]  ;;  %v323_v61 = vld [vmem:[%s3038_s6 + $0xf8] sm:$0xff] }
  0x82   : > { %4155 = vst [vmem:[#allocation31_spill] sm:$0xff] %v3416_v36  ;;  %4156 = vst [vmem:[#allocation32_spill] sm:$0xff] %v3418_v34  ;;  %v3424_v39 = vadd.f32 %v1438_v24, %v1258_v42  ;;  %v965_v62 = vsel %vm942_vm3, %v811_v38, %v964_v9  ;;  %v2706_v28 = vrot.slane %v496_v26, 9  ;;  %v2707_v1 = vrot.slane %v498_v47, 9  ;;  %v2031_v38 = vld [vmem:[%s4103_s2] sm:$0xf] }
  0x83   : > { %4157 = vst [vmem:[#allocation33_spill] sm:$0xff] %v3420_v54  ;;  %v966_v27 = vsel %vm944_vm4, %v815_v17, %v965_v62  ;;  %v2708_v50 = vrot.slane %v506_v30, 9  ;;  %v2709_v20 = vrot.slane %v514_v56, 9  ;;  %v2710_v63 = vrot.slane %v513_v35, 9  ;;  %2771 = vmatprep.subr.msk.mxu0 %vm2433_vm9, %v2031_v38  ;;  %2785 = vmatprep.subr.msk.mxu1 %vm2433_vm9, %v2031_v38 }
  0x84   : > { %4158 = vst [vmem:[#allocation34_spill] sm:$0xff] %v3424_v39  ;;  %v967_v4 = vsel %vm946_vm5, %v819_v29, %v966_v27  ;;  %v2711_v57 = vrot.slane %v515_v41, 9  ;;  %v1227_v34 = vadd.f32 %v2704_v40, %v489_v43  ;;  %v1228_v36 = vadd.f32 %v2705_v16, %v497_v55  ;;  %2772 = vmatpush3.msk.msra.mxu0 %vm2433_vm9, %v2031_v38 }
  0x85   : > { %v968_v54 = vsel %vm948_vm6, %v823_v31, %v967_v4  ;;  %v1229_v42 = vadd.f32 %v2706_v28, %v496_v26  ;;  %v1230_v24 = vadd.f32 %v2707_v1, %v498_v47  ;;  %v1231_v39 = vadd.f32 %v2708_v50, %v506_v30  ;;  %2786 = vmatpush3.msk.msra.mxu1 %vm2433_vm9, %v2031_v38 }
  0x86   : > { %v969_v17 = vsel %vm950_vm7, %v827_v2, %v968_v54  ;;  %v1232_v9 = vadd.f32 %v2709_v20, %v514_v56  ;;  %v1233_v62 = vadd.f32 %v2710_v63, %v513_v35  ;;  %v1234_v32 = vadd.f32 %v2711_v57, %v515_v41 }
  0x87   : > { %v1006_v29 = vsel %vm1002_vm8, 0.0, %v969_v17  ;;  %v347_v43 = vadd.f32 %v323_v61, %v321_v33  ;;  %v362_v55 = vadd.f32 %v346_v25, %v3293_v7  ;;  %v3441_v30 = vcombine.high %v3117_v23, %v3117_v23 }
  0x88   : > { %v1326_v40 = vcombine.high %v1006_v29, %v1006_v29  ;;  %v1333_v26 = vrot.slane %v1006_v29, %v3098_v13  ;;  %vm2416_vm11 = vcmask 31744   ;;  %vm2542_vm12 = vcmask 64512  }
  0x89   : > { %v363_v47 = vadd.f32 %v347_v43, %v3297_v37  ;;  %v618_v56 = vcombine.high %v362_v55, %v362_v55  ;;  %v3445_v35 = vrot.slane %v362_v55, %v3098_v13 }
  0x8a   : > { %v1340_v7 = vrot.slane %v1326_v40, %v3098_v13  ;;  %v1341_v25 = vcombine.high %v1333_v26, %v1333_v26  ;;  %v1423_v41 = vrot.slane %v1333_v26, 1  ;;  %v3459_v27 = vadd.f32 %v1333_v26, %v1227_v34 }
  0x8b   : > { %v3450_v31 = vrot.slane %v618_v56, %v3098_v13  ;;  %v3454_v23 = vcombine.high %v3445_v35, %v3445_v35  ;;  %v635_v37 = vcombine.high %v363_v47, %v363_v47  ;;  %v3457_v54 = vrot.slane %v363_v47, %v3098_v13 }
  0x8c   : > { %v1342_v2 = vcombine.high %v1340_v7, %v1340_v7  ;;  %v1424_v16 = vrot.slane %v1341_v25, 1  ;;  %v1425_v28 = vrot.slane %v1340_v7, 1  ;;  %v3461_v50 = vadd.f32 %v1423_v41, %v1228_v36 }
  0x8d   : > { %v3463_v20 = vadd.f32 %v1341_v25, %v1229_v42  ;;  %v3467_v63 = vcombine.high %v3450_v31, %v3450_v31  ;;  %v3470_v4 = vrot.slane %v635_v37, %v3098_v13  ;;  %v3474_v61 = vadd.f32 %v1340_v7, %v1231_v39 }
  0x8e   : > { %v1426_v57 = vrot.slane %v1342_v2, 1  ;;  %v3472_v33 = vadd.f32 %v1424_v16, %v1230_v24  ;;  %v3476_v38 = vadd.f32 %v1425_v28, %v1232_v9  ;;  %v3478_v34 = vadd.f32 %v1342_v2, %v1233_v62  ;;  %v4163_v62 = vld [vmem:[#allocation6_spill] sm:$0xff]  ;;  %v4164_v9 = vld [vmem:[#allocation8_spill] sm:$0xff] }
  0x8f   : > { %v3482_v36 = vcombine.high %v3457_v54, %v3457_v54  ;;  %v915_v42 = vrot.slane %v3445_v35, %v3028_v6  ;;  %v919_v17 = vrot.slane %v3454_v23, %v3028_v6  ;;  %v3492_v39 = vcombine.high %v3470_v4, %v3470_v4 }
  0x90   : > { %v3488_v29 = vadd.f32 %v1426_v57, %v1234_v32  ;;  %v923_v24 = vrot.slane %v3450_v31, %v3028_v6 }
  0x91   : > { %v988_v55 = vsel %vm940_vm2, %v919_v17, %v915_v42 }
  0x92   : > { %v1589_v40 = vpop.permute.xlu0 %1588  ;;  %v1596_v26 = vpop.permute.xlu1 %1595  ;;  %v3506_v47 = vsel %vm942_vm3, %v923_v24, %v988_v55 }
  0x93   : > { %v1653_v41 = vrot.slane %v1589_v40, %v3062_v44  ;;  %v1660_v37 = vrot.slane %v1589_v40, %v3071_v51  ;;  %v1667_v2 = vrot.slane %v1589_v40, %v3074_v52  ;;  %v3515_v16 = vrot.slane %v1589_v40, %v3093_v3 }
  0x94   : > { %v1681_v28 = vrot.slane %v1596_v26, %v3062_v44  ;;  %v1688_v57 = vrot.slane %v1596_v26, %v3071_v51  ;;  %v1695_v42 = vrot.slane %v1596_v26, %v3074_v52  ;;  %v1702_v25 = vrot.slane %v1596_v26, %v3093_v3 }
  0x95   : > { %v1871_v24 = vrot.slane %v1653_v41, 1  ;;  %v1872_v55 = vrot.slane %v1660_v37, 1  ;;  %v1873_v1 = vrot.slane %v1667_v2, 1  ;;  %v3524_v56 = vmul.f32 %v1653_v41, %v3171_v46 }
  0x96   : > { %v3527_v40 = vmul.f32 %v1660_v37, %v3179_v11  ;;  %v3530_v32 = vmul.f32 %v1667_v2, %v3181_v12  ;;  %v3540_v26 = vmul.f32 %v3515_v16, %v3189_v22  ;;  %v1875_v7 = vrot.slane %v1681_v28, 1  ;;  %v1617_v11 = vpop.permute.xlu0 %1616 }
  0x97   : > { %v3533_v43 = vmul.f32 %v1871_v24, %v3177_v10  ;;  %v3536_v17 = vmul.f32 %v1872_v55, %v3184_v21  ;;  %v3543_v46 = vmul.f32 %v1873_v1, %v3186_v18  ;;  %v1876_v41 = vrot.slane %v1688_v57, 1  ;;  %v4162_v24 = vld [vmem:[#allocation7_spill] sm:$0xff] }
  0x98   : > { %4159 = vst [vmem:[#allocation35_spill] sm:$0xff] %v3527_v40  ;;  %4160 = vst [vmem:[#allocation36_spill] sm:$0xff] %v3530_v32  ;;  %v1877_v37 = vrot.slane %v1695_v42, 1  ;;  %v1878_v22 = vrot.slane %v1702_v25, 1  ;;  %v1975_v2 = vmul.f32 %v1681_v28, %v3208_v8  ;;  %v1976_v18 = vmul.f32 %v1875_v7, %v3214_v15  ;;  %v4166_v32 = vld [vmem:[#allocation9_spill] sm:$0xff]  ;;  %v4168_v8 = vld [vmem:[#allocation10_spill] sm:$0xff] }
  0x99   : > { %4161 = vst [vmem:[#allocation37_spill] sm:$0xff] %v3536_v17  ;;  %v1977_v1 = vmul.f32 %v1688_v57, %v3216_v45  ;;  %v3557_v55 = vmul.f32 %v1876_v41, %v4162_v24  ;;  %v3562_v10 = vmul.f32 %v1695_v42, %v4163_v62  ;;  %v3568_v40 = vmul.f32 %v1702_v25, %v4166_v32  ;;  %v1624_v25 = vpop.permute.xlu1 %1623  ;;  %v4171_v24 = vld [vmem:[#allocation11_spill] sm:$0xff]  ;;  %v4174_v62 = vld [vmem:[#allocation13_spill] sm:$0xff]  ;;  %v4193_v17 = vld [vmem:[#allocation24_spill] sm:$0xff] }
  0x9a   : > { %v3565_v21 = vmul.f32 %v1877_v37, %v4164_v9  ;;  %v3571_v15 = vmul.f32 %v1878_v22, %v4168_v8  ;;  %v2138_v45 = vrot.slane %v1975_v2, %v3025_v5  ;;  %v2142_v7 = vrot.slane %v1976_v18, %v3025_v5  ;;  %v4176_v2 = vld [vmem:[#allocation14_spill] sm:$0xff] }
  0x9b   : > { %4167 = vst [vmem:[#allocation6_spill] sm:$0xff] %v3568_v40  ;;  %v2146_v28 = vrot.slane %v1977_v1, %v3025_v5  ;;  %v1765_v32 = vrot.slane %v1617_v11, %v3062_v44  ;;  %v1772_v41 = vrot.slane %v1617_v11, %v3071_v51  ;;  %v1779_v37 = vrot.slane %v1617_v11, %v3074_v52 }
  0x9c   : > { %4165 = vst [vmem:[#allocation7_spill] sm:$0xff] %v3565_v21  ;;  %4169 = vst [vmem:[#allocation8_spill] sm:$0xff] %v3571_v15  ;;  %v2367_v42 = vsel %vm2359_vm10, %v2142_v7, %v2138_v45  ;;  %v3587_v22 = vrot.slane %v1617_v11, %v3093_v3  ;;  %v1793_v7 = vrot.slane %v1624_v25, %v3062_v44  ;;  %v4181_v21 = vld [vmem:[#allocation16_spill] sm:$0xff] }
  0x9d   : > { %v3592_v18 = vsel %vm940_vm2, %v2146_v28, %v2367_v42  ;;  %v1887_v1 = vrot.slane %v1765_v32, 1  ;;  %v3595_v8 = vmul.f32 %v1765_v32, %v4171_v24  ;;  %v1888_v9 = vrot.slane %v1772_v41, 1  ;;  %v4178_v28 = vld [vmem:[#allocation17_spill] sm:$0xff]  ;;  %v4180_v32 = vld [vmem:[#allocation15_spill] sm:$0xff] }
  0x9e   : > { %4170 = vst [vmem:[#allocation9_spill] sm:$0xff] %v3587_v22  ;;  %v1889_v12 = vrot.slane %v1779_v37, 1  ;;  %v3598_v45 = vmul.f32 %v1772_v41, %v3274_v48  ;;  %v3606_v40 = vmul.f32 %v1779_v37, %v4176_v2  ;;  %v3610_v42 = vmul.f32 %v3587_v22, %v4178_v28  ;;  %v4183_v22 = vld [vmem:[#allocation20_spill] sm:$0xff] }
  0x9f   : > { %4172 = vst [vmem:[#allocation10_spill] sm:$0xff] %v3595_v8  ;;  %v3603_v57 = vmul.f32 %v1887_v1, %v4174_v62  ;;  %v3613_v24 = vmul.f32 %v1888_v9, %v4180_v32  ;;  %v1800_v11 = vrot.slane %v1624_v25, %v3071_v51  ;;  %v1807_v2 = vrot.slane %v1624_v25, %v3074_v52  ;;  %v4184_v8 = vld [vmem:[#allocation18_spill] sm:$0xff] }
  0xa0   : > { %4173 = vst [vmem:[#allocation11_spill] sm:$0xff] %v3598_v45  ;;  %4177 = vst [vmem:[#allocation14_spill] sm:$0xff] %v3606_v40  ;;  %v3616_v48 = vmul.f32 %v1889_v12, %v4181_v21  ;;  %v1814_v1 = vrot.slane %v1624_v25, %v3093_v3  ;;  %v1891_v12 = vrot.slane %v1793_v7, 1  ;;  %v2007_v28 = vmul.f32 %v1793_v7, %v3310_v53  ;;  %v4186_v45 = vld [vmem:[#allocation19_spill] sm:$0xff]  ;;  %v4189_v9 = vld [vmem:[#allocation22_spill] sm:$0xff] }
  0xa1   : > { %4175 = vst [vmem:[#allocation13_spill] sm:$0xff] %v3603_v57  ;;  %4179 = vst [vmem:[#allocation17_spill] sm:$0xff] %v3610_v42  ;;  %v1892_v21 = vrot.slane %v1800_v11, 1  ;;  %v1893_v32 = vrot.slane %v1807_v2, 1  ;;  %v2009_v42 = vmul.f32 %v1800_v11, %v4183_v22  ;;  %v3632_v62 = vmul.f32 %v1807_v2, %v4184_v8  ;;  %v1603_v57 = vpop.permute.xlu0 %1602  ;;  %v4191_v53 = vld [vmem:[#allocation21_spill] sm:$0xff] }
  0xa2   : > { %4182 = vst [vmem:[#allocation15_spill] sm:$0xff] %v3616_v48  ;;  %v1894_v41 = vrot.slane %v1814_v1, 1  ;;  %v2008_v25 = vmul.f32 %v1891_v12, %v4186_v45  ;;  %v4187_v48 = vld [vmem:[#allocation23_spill] sm:$0xff]  ;;  %v3641_v40 = vmul.f32 %v1814_v1, %v4189_v9  ;;  %v2266_v8 = vrot.slane %v2007_v28, %v3025_v5  ;;  %v1631_v9 = vpop.permute.xlu1 %1630 }
  0xa3   : > { %4185 = vst [vmem:[#allocation16_spill] sm:$0xff] %v3632_v62  ;;  %v3638_v15 = vmul.f32 %v1892_v21, %v4187_v48  ;;  %v3644_v7 = vmul.f32 %v1893_v32, %v4191_v53  ;;  %v2274_v11 = vrot.slane %v2009_v42, %v3025_v5  ;;  %v1709_v1 = vrot.slane %v1603_v57, %v3062_v44 }
  0xa4   : > { %4190 = vst [vmem:[#allocation18_spill] sm:$0xff] %v3641_v40  ;;  %v3647_v22 = vmul.f32 %v1894_v41, %v4193_v17  ;;  %v2270_v2 = vrot.slane %v2008_v25, %v3025_v5  ;;  %v1716_v17 = vrot.slane %v1603_v57, %v3071_v51  ;;  %v1723_v41 = vrot.slane %v1603_v57, %v3074_v52 }
  0xa5   : > { %4188 = vst [vmem:[#allocation20_spill] sm:$0xff] %v3638_v15  ;;  %4192 = vst [vmem:[#allocation19_spill] sm:$0xff] %v3644_v7  ;;  %v1730_v42 = vrot.slane %v1603_v57, %v3093_v3  ;;  %v1879_v32 = vrot.slane %v1709_v1, 1  ;;  %v1983_v25 = vmul.f32 %v1709_v1, %v3356_v58  ;;  %v1821_v37 = vrot.slane %v1631_v9, %v3062_v44  ;;  %v4195_v57 = vld [vmem:[#allocation27_spill] sm:$0xff]  ;;  %v4198_v1 = vld [vmem:[#allocation26_spill] sm:$0xff] }
  0xa6   : > { %4194 = vst [vmem:[#allocation23_spill] sm:$0xff] %v3647_v22  ;;  %v2395_v28 = vsel %vm2359_vm10, %v2270_v2, %v2266_v8  ;;  %v1880_v53 = vrot.slane %v1716_v17, 1  ;;  %v1881_v48 = vrot.slane %v1723_v41, 1  ;;  %v1985_v40 = vmul.f32 %v1716_v17, %v3362_v19  ;;  %v4197_v2 = vld [vmem:[#allocation25_spill] sm:$0xff]  ;;  %v4199_v7 = vld [vmem:[#allocation28_spill] sm:$0xff] }
  0xa7   : > { %v1882_v45 = vrot.slane %v1730_v42, 1  ;;  %v1984_v12 = vmul.f32 %v1879_v32, %v3360_v49  ;;  %v3670_v62 = vmul.f32 %v1723_v41, %v3364_v14  ;;  %v3673_v15 = vmul.f32 %v1730_v42, %v4195_v57  ;;  %v4201_v41 = vld [vmem:[#allocation30_spill] sm:$0xff] }
  0xa8   : > { %v3676_v8 = vsel %vm940_vm2, %v2274_v11, %v2395_v28  ;;  %v3679_v58 = vmul.f32 %v1880_v53, %v4197_v2  ;;  %v3682_v21 = vmul.f32 %v1881_v48, %v4198_v1  ;;  %v2170_v49 = vrot.slane %v1983_v25, %v3025_v5  ;;  %v4200_v2 = vld [vmem:[#allocation29_spill] sm:$0xff]  ;;  %v4205_v28 = vld [vmem:[#allocation32_spill] sm:$0xff] }
  0xa9   : > { %4196 = vst [vmem:[#allocation22_spill] sm:$0xff] %v3673_v15  ;;  %v3685_v22 = vmul.f32 %v1882_v45, %v4199_v7  ;;  %v2174_v19 = vrot.slane %v1984_v12, %v3025_v5  ;;  %v2178_v14 = vrot.slane %v1985_v40, %v3025_v5  ;;  %v1828_v48 = vrot.slane %v1631_v9, %v3071_v51  ;;  %v4202_v11 = vld [vmem:[#allocation33_spill] sm:$0xff] }
  0xaa   : > { %v1835_v7 = vrot.slane %v1631_v9, %v3074_v52  ;;  %v1842_v42 = vrot.slane %v1631_v9, %v3093_v3  ;;  %v1895_v12 = vrot.slane %v1821_v37, 1  ;;  %v2015_v40 = vmul.f32 %v1821_v37, %v3404_v60  ;;  %v1610_v9 = vpop.permute.xlu0 %1609  ;;  %v4204_v60 = vld [vmem:[#allocation31_spill] sm:$0xff] }
  0xab   : > { %v2374_v45 = vsel %vm2359_vm10, %v2174_v19, %v2170_v49  ;;  %v1896_v32 = vrot.slane %v1828_v48, 1  ;;  %v2017_v53 = vmul.f32 %v1828_v48, %v3410_v0  ;;  %v4206_v48 = vld [vmem:[#allocation34_spill] sm:$0xff] }
  0xac   : > { %v1897_v25 = vrot.slane %v1835_v7, 1  ;;  %v1898_v57 = vrot.slane %v1842_v42, 1  ;;  %v2016_v1 = vmul.f32 %v1895_v12, %v4200_v2  ;;  %v3706_v17 = vmul.f32 %v1835_v7, %v4201_v41 }
  0xad   : > { %v3709_v49 = vmul.f32 %v1842_v42, %v4202_v11  ;;  %v3712_v19 = vsel %vm940_vm2, %v2178_v14, %v2374_v45  ;;  %v3715_v37 = vmul.f32 %v1896_v32, %v4204_v60  ;;  %v2298_v0 = vrot.slane %v2015_v40, %v3025_v5 }
  0xae   : > { %v3718_v15 = vmul.f32 %v1897_v25, %v4205_v28  ;;  %v3722_v12 = vmul.f32 %v1898_v57, %v4206_v48  ;;  %v2302_v41 = vrot.slane %v2016_v1, %v3025_v5  ;;  %v2306_v11 = vrot.slane %v2017_v53, %v3025_v5 }
  0xaf   : > { %4203 = vst [vmem:[#allocation21_spill] sm:$0xff] %v3709_v49  ;;  %v1737_v42 = vrot.slane %v1610_v9, %v3062_v44  ;;  %v1744_v40 = vrot.slane %v1610_v9, %v3071_v51  ;;  %v1751_v25 = vrot.slane %v1610_v9, %v3074_v52  ;;  %v1758_v53 = vrot.slane %v1610_v9, %v3093_v3 }
  0xb0   : > { %v2402_v32 = vsel %vm2359_vm10, %v2302_v41, %v2298_v0  ;;  %v4207_v60 = vrot.slane %v3467_v63, %v3028_v6 }
  0xb1   : > { %v1883_v57 = vrot.slane %v1737_v42, 1  ;;  %v1884_v2 = vrot.slane %v1744_v40, 1  ;;  %v1991_v1 = vmul.f32 %v1737_v42, %v3459_v27  ;;  %v1885_v45 = vrot.slane %v1751_v25, 1 }
  0xb2   : > { %v990_v48 = vsel %vm944_vm4, %v4207_v60, %v3506_v47  ;;  %v1886_v7 = vrot.slane %v1758_v53, 1  ;;  %v1993_v28 = vmul.f32 %v1744_v40, %v3463_v20  ;;  %v3747_v0 = vmul.f32 %v1751_v25, %v3474_v61 }
  0xb3   : > { %v3750_v41 = vsel %vm940_vm2, %v2306_v11, %v2402_v32  ;;  %v1992_v9 = vmul.f32 %v1883_v57, %v3461_v50  ;;  %v3754_v27 = vmul.f32 %v1884_v2, %v3472_v33  ;;  %v3757_v42 = vmul.f32 %v1758_v53, %v3478_v34 }
  0xb4   : > { %4208 = vst [vmem:[#allocation24_spill] sm:$0xff] %v3747_v0  ;;  %v3760_v47 = vmul.f32 %v1885_v45, %v3476_v38  ;;  %v3763_v60 = vmul.f32 %v1886_v7, %v3488_v29  ;;  %v2202_v20 = vrot.slane %v1991_v1, %v3025_v5  ;;  %v2210_v61 = vrot.slane %v1993_v28, %v3025_v5 }
  0xb5   : > { %4209 = vst [vmem:[#allocation27_spill] sm:$0xff] %v3757_v42  ;;  %v2206_v11 = vrot.slane %v1992_v9, %v3025_v5  ;;  %v4211_v34 = vrot.slane %v3457_v54, %v3028_v6  ;;  %v4212_v7 = vrot.slane %v3482_v36, %v3028_v6  ;;  %v2740_v40 = vrot.slane %v3457_v54, 9 }
  0xb6   : > { %4210 = vst [vmem:[#allocation25_spill] sm:$0xff] %v3760_v47  ;;  %v2741_v28 = vrot.slane %v3482_v36, 9  ;;  %v4213_v25 = vrot.slane %v3470_v4, %v3028_v6  ;;  %v2742_v57 = vrot.slane %v3470_v4, 9  ;;  %v2743_v2 = vrot.slane %v3492_v39, 9 }
  0xb7   : > { %v991_v38 = vsel %vm946_vm5, %v4211_v34, %v990_v48  ;;  %v2381_v1 = vsel %vm2359_vm10, %v2206_v11, %v2202_v20  ;;  %v1638_v48 = vpop.permute.xlu1 %1637  ;;  %v4214_v34 = vrot.slane %v3445_v35, 9  ;;  %v4216_v6 = vrot.slane %v3450_v31, 9 }
  0xb8   : > { %v992_v45 = vsel %vm948_vm6, %v4212_v7, %v991_v38  ;;  %v4215_v7 = vrot.slane %v3454_v23, 9  ;;  %v1263_v20 = vadd.f32 %v2740_v40, %v3457_v54  ;;  %v1264_v11 = vadd.f32 %v2741_v28, %v3482_v36 }
  0xb9   : > { %v993_v53 = vsel %vm950_vm7, %v4213_v25, %v992_v45  ;;  %v1259_v38 = vadd.f32 %v4214_v34, %v3445_v35  ;;  %v1261_v45 = vadd.f32 %v4216_v6, %v3450_v31  ;;  %v4217_v25 = vrot.slane %v3467_v63, 9 }
  0xba   : > { %v1010_v9 = vsel %vm1002_vm8, 0.0, %v993_v53  ;;  %v1260_v29 = vadd.f32 %v4215_v7, %v3454_v23  ;;  %v1265_v53 = vadd.f32 %v2742_v57, %v3470_v4  ;;  %v1266_v35 = vadd.f32 %v2743_v2, %v3492_v39 }
  0xbb   : > { %v1262_v32 = vadd.f32 %v4217_v25, %v3467_v63  ;;  %v1394_v34 = vcombine.high %v1010_v9, %v1010_v9  ;;  %v1401_v33 = vrot.slane %v1010_v9, %v3098_v13  ;;  %v1849_v23 = vrot.slane %v1638_v48, %v3062_v44 }
  0xbc   : > { %v1856_v7 = vrot.slane %v1638_v48, %v3071_v51  ;;  %v1863_v31 = vrot.slane %v1638_v48, %v3074_v52  ;;  %v1870_v6 = vrot.slane %v1638_v48, %v3093_v3  ;;  %v2687_v52 = vrot.slane %v3441_v30, 9 }
  0xbd   : > { %v1408_v63 = vrot.slane %v1394_v34, %v3098_v13  ;;  %v1409_v54 = vcombine.high %v1401_v33, %v1401_v33  ;;  %v1439_v40 = vrot.slane %v1401_v33, 1  ;;  %v1563_v36 = vadd.f32 %v1401_v33, %v1259_v38 }
  0xbe   : > { %v1899_v28 = vrot.slane %v1849_v23, 1  ;;  %v1900_v4 = vrot.slane %v1856_v7, 1  ;;  %v1901_v57 = vrot.slane %v1863_v31, 1  ;;  %v1902_v39 = vrot.slane %v1870_v6, 1 }
  0xbf   : > { %v1410_v2 = vcombine.high %v1408_v63, %v1408_v63  ;;  %v1440_v25 = vrot.slane %v1409_v54, 1  ;;  %v1441_v9 = vrot.slane %v1408_v63, 1  ;;  %v1564_v50 = vadd.f32 %v1439_v40, %v1260_v29 }
  0xc0   : > { %v1565_v44 = vadd.f32 %v1409_v54, %v1261_v45  ;;  %v1567_v14 = vadd.f32 %v1408_v63, %v1263_v20  ;;  %v2023_v51 = vmul.f32 %v1849_v23, %v1563_v36  ;;  %v3818_v34 = vsel %vm940_vm2, %v2210_v61, %v2381_v1  ;;  %v4223_v36 = vld [vmem:[#allocation35_spill] sm:$0xff] }
  0xc1   : > { %v1442_v42 = vrot.slane %v1410_v2, 1  ;;  %v1566_v3 = vadd.f32 %v1440_v25, %v1262_v32  ;;  %v1568_v48 = vadd.f32 %v1441_v9, %v1264_v11  ;;  %v1569_v13 = vadd.f32 %v1410_v2, %v1265_v53  ;;  %v4230_v25 = vld [vmem:[#allocation7_spill] sm:$0xff] }
  0xc2   : > { %v2024_v33 = vmul.f32 %v1899_v28, %v1564_v50  ;;  %v2025_v38 = vmul.f32 %v1856_v7, %v1565_v44  ;;  %v3820_v47 = vmul.f32 %v1863_v31, %v1567_v14  ;;  %v2330_v20 = vrot.slane %v2023_v51, %v3025_v5  ;;  %v4232_v51 = vld [vmem:[#allocation12_spill] sm:$0xff] }
  0xc3   : > { %v1570_v49 = vadd.f32 %v1442_v42, %v1266_v35  ;;  %v3822_v0 = vmul.f32 %v1900_v4, %v1566_v3  ;;  %v3824_v29 = vmul.f32 %v1901_v57, %v1568_v48  ;;  %v3826_v45 = vmul.f32 %v1870_v6, %v1569_v13  ;;  %v4226_v4 = vld [vmem:[#allocation5_spill] sm:$0xff]  ;;  %v4235_v13 = vld [vmem:[#allocation6_spill] sm:$0xff] }
  0xc4   : > { %v2334_v32 = vrot.slane %v2024_v33, %v3025_v5  ;;  %v2338_v11 = vrot.slane %v2025_v38, %v3025_v5  ;;  %v1210_v61 = vadd.f32 %v2687_v52, %v3441_v30  ;;  %v2346_v42 = vrot.slane %v3820_v47, %v3025_v5  ;;  %v4233_v52 = vld [vmem:[#allocation36_spill] sm:$0xff] }
  0xc5   : > { %v3832_v50 = vmul.f32 %v1902_v39, %v1570_v49  ;;  %v2342_v14 = vrot.slane %v3822_v0, %v3025_v5  ;;  %v2350_v1 = vrot.slane %v3824_v29, %v3025_v5  ;;  %v2354_v53 = vrot.slane %v3826_v45, %v3025_v5  ;;  %v4227_v39 = vld [vmem:[#allocation37_spill] sm:$0xff] }
  0xc6   : > { %v2409_v35 = vsel %vm2359_vm10, %v2334_v32, %v2330_v20  ;;  %v4218_v23 = vrot.slane %v3175_v59, 1  ;;  %v2126_v30 = vrot.slane %v3543_v46, %v3025_v5  ;;  %v2130_v0 = vrot.slane %v3540_v26, %v3025_v5  ;;  %v4237_v32 = vld [vmem:[#allocation15_spill] sm:$0xff]  ;;  %v2744_v29 = vld [vmem:[%s4104_s3] ss:$0 sm:$0xff] }
  0xc7   : > { %v2410_v49 = vsel %vm940_vm2, %v2338_v11, %v2409_v35  ;;  %v4219_v31 = vrot.slane %v3524_v56, %v3025_v5  ;;  %v4220_v6 = vrot.slane %v3533_v43, %v3025_v5  ;;  %v4221_v59 = vrot.slane %v3557_v55, %v3025_v5 }
  0xc8   : > { %v1514_v7 = vadd.f32 %v4218_v23, %v1210_v61  ;;  %v4222_v46 = vrot.slane %v3515_v16, 1  ;;  %v4224_v26 = vrot.slane %v4223_v36, %v3025_v5  ;;  %v4225_v56 = vrot.slane %v3562_v10, %v3025_v5  ;;  %v4229_v16 = vld [vmem:[#allocation8_spill] sm:$0xff]  ;;  %v4242_v36 = vld [vmem:[#allocation17_spill] sm:$0xff] }
  0xc9   : > { %v2360_v63 = vsel %vm2359_vm10, %v4220_v6, %v4219_v31  ;;  %v2369_v54 = vsel %vm942_vm3, %v4221_v59, %v3592_v18  ;;  %v549_v57 = vcombine.high %v4226_v4, %v4226_v4  ;;  %v4228_v55 = vrot.slane %v4227_v39, %v3025_v5  ;;  %v4240_v6 = vld [vmem:[#allocation13_spill] sm:$0xff]  ;;  %v4246_v39 = vld [vmem:[#allocation23_spill] sm:$0xff] }
  0xca   : > { %v1974_v40 = vmul.f32 %v4222_v46, %v1514_v7  ;;  %v2361_v28 = vsel %vm940_vm2, %v4224_v26, %v2360_v63  ;;  %v2370_v43 = vsel %vm944_vm4, %v4225_v56, %v2369_v54  ;;  %v2166_v2 = vrot.slane %v4229_v16, %v3025_v5  ;;  %v4238_v7 = vld [vmem:[#allocation10_spill] sm:$0xff] }
  0xcb   : > { %v2362_v18 = vsel %vm942_vm3, %v4228_v55, %v2361_v28  ;;  %v4231_v9 = vrot.slane %v4230_v25, %v3025_v5  ;;  %v1430_v10 = vrot.slane %v4232_v51, 1  ;;  %v4234_v3 = vrot.slane %v4233_v52, %v3025_v5  ;;  %v4243_v28 = vld [vmem:[#allocation11_spill] sm:$0xff] }
  0xcc   : > { %v4236_v33 = vrot.slane %v4235_v13, %v3025_v5  ;;  %v2719_v20 = vrot.slane %v549_v57, 9  ;;  %v2254_v11 = vrot.slane %v4237_v32, %v3025_v5  ;;  %v2134_v61 = vrot.slane %v1974_v40, %v3025_v5 }
  0xcd   : > { %v2371_v44 = vsel %vm946_vm5, %v4231_v9, %v2370_v43  ;;  %v2363_v48 = vsel %vm944_vm4, %v4234_v3, %v2362_v18  ;;  %v4239_v31 = vrot.slane %v4238_v7, %v3025_v5  ;;  %v4241_v63 = vrot.slane %v4240_v6, %v3025_v5  ;;  %v4262_v6 = vld [vmem:[#allocation22_spill] sm:$0xff] }
  0xce   : > { %v2372_v38 = vsel %vm948_vm6, %v4236_v33, %v2371_v44  ;;  %v2364_v35 = vsel %vm946_vm5, %v2126_v30, %v2363_v48  ;;  %v1242_v46 = vadd.f32 %v2719_v20, %v549_v57  ;;  %v2258_v26 = vrot.slane %v4242_v36, %v3025_v5 }
  0xcf   : > { %v2373_v23 = vsel %vm950_vm7, %v2166_v2, %v2372_v38  ;;  %v2388_v59 = vsel %vm2359_vm10, %v4241_v63, %v4239_v31  ;;  %v2365_v54 = vsel %vm948_vm6, %v2130_v0, %v2364_v35  ;;  %v4244_v40 = vrot.slane %v4243_v28, %v3025_v5  ;;  %v4247_v0 = vld [vmem:[#allocation20_spill] sm:$0xff]  ;;  %v4249_v2 = vld [vmem:[#allocation14_spill] sm:$0xff] }
  0xd0   : > { %v2366_v56 = vsel %vm950_vm7, %v2134_v61, %v2365_v54  ;;  %v4245_v43 = vrot.slane %v3613_v24, %v3025_v5  ;;  %v2294_v55 = vrot.slane %v4246_v39, %v3025_v5  ;;  %v4248_v57 = vrot.slane %v4247_v0, %v3025_v5  ;;  %v4251_v24 = vld [vmem:[#allocation16_spill] sm:$0xff]  ;;  %v4259_v61 = vld [vmem:[#allocation18_spill] sm:$0xff] }
  0xd1   : > { %v2389_v30 = vsel %vm940_vm2, %v4244_v40, %v2388_v59  ;;  %2773 = vmatprep.mubr.msk.f32.mxu0 %vm2416_vm11, %v2366_v56  ;;  %v1546_v16 = vadd.f32 %v1430_v10, %v1242_v46  ;;  %v4250_v25 = vrot.slane %v4249_v2, %v3025_v5  ;;  %v4252_v44 = vrot.slane %v4251_v24, %v3025_v5  ;;  %v4254_v10 = vld [vmem:[#allocation19_spill] sm:$0xff]  ;;  %v4268_v56 = vld [vmem:[#allocation24_spill] sm:$0xff] }
  0xd2   : > { %v2390_v4 = vsel %vm942_vm3, %v4245_v43, %v2389_v30  ;;  %v2397_v18 = vsel %vm942_vm3, %v4248_v57, %v3676_v8  ;;  %v4253_v52 = vrot.slane %v3679_v58, %v3025_v5  ;;  %2774 = vmatmul.mubr.msk.f32.vlgmr.msra.gmra.mrb[0].mxu0 %vm2416_vm11, %v2373_v23  ;;  %v4255_v48 = vrot.slane %v4254_v10, %v3025_v5  ;;  %v4257_v58 = vld [vmem:[#allocation9_spill] sm:$0xff] }
  0xd3   : > { %v2391_v9 = vsel %vm944_vm4, %v4250_v25, %v2390_v4  ;;  %v2398_v51 = vsel %vm944_vm4, %v4252_v44, %v2397_v18  ;;  %v2198_v33 = vrot.slane %v3685_v22, %v3025_v5  ;;  %v4256_v38 = vrot.slane %v3670_v62, %v3025_v5 }
  0xd4   : > { %v2376_v3 = vsel %vm942_vm3, %v4253_v52, %v3712_v19  ;;  %v2392_v8 = vsel %vm946_vm5, %v2254_v11, %v2391_v9  ;;  %v2399_v13 = vsel %vm946_vm5, %v4255_v48, %v2398_v51  ;;  %v4258_v32 = vrot.slane %v4257_v58, 1 }
  0xd5   : > { %v2377_v20 = vsel %vm944_vm4, %v4256_v38, %v2376_v3  ;;  %v4260_v35 = vrot.slane %v4259_v61, %v3025_v5  ;;  %v4261_v23 = vrot.slane %v3682_v21, %v3025_v5  ;;  %v2326_v22 = vrot.slane %v3722_v12, %v3025_v5 }
  0xd6   : > { %v2006_v19 = vmul.f32 %v4258_v32, %v1546_v16  ;;  %v2393_v62 = vsel %vm948_vm6, %v2258_v26, %v2392_v8  ;;  %v4263_v63 = vrot.slane %v4262_v6, %v3025_v5  ;;  %v4264_v54 = vrot.slane %v3715_v37, %v3025_v5 }
  0xd7   : > { %v2400_v11 = vsel %vm948_vm6, %v4260_v35, %v2399_v13  ;;  %v2378_v7 = vsel %vm946_vm5, %v4261_v23, %v2377_v20  ;;  %v4265_v12 = vrot.slane %v3706_v17, %v3025_v5  ;;  %v4266_v28 = vrot.slane %v3754_v27, %v3025_v5 }
  0xd8   : > { %v2401_v31 = vsel %vm950_vm7, %v2294_v55, %v2400_v11  ;;  %v2379_v59 = vsel %vm948_vm6, %v4263_v63, %v2378_v7  ;;  %v2404_v21 = vsel %vm942_vm3, %v4264_v54, %v3750_v41  ;;  %v2262_v46 = vrot.slane %v2006_v19, %v3025_v5  ;;  %v4272_v55 = vld [vmem:[#allocation25_spill] sm:$0xff] }
  0xd9   : > { %v2380_v36 = vsel %vm950_vm7, %v2198_v33, %v2379_v59  ;;  %v2405_v26 = vsel %vm944_vm4, %v4265_v12, %v2404_v21  ;;  %v2383_v40 = vsel %vm942_vm3, %v4266_v28, %v3818_v34  ;;  %v4267_v37 = vrot.slane %v3718_v15, %v3025_v5  ;;  %v4270_v34 = vld [vmem:[#allocation21_spill] sm:$0xff] }
  0xda   : > { %2776 = vmatprep.mubr.msk.f32.mxu0 %vm2416_vm11, %v2380_v36  ;;  %v2230_v30 = vrot.slane %v3763_v60, %v3025_v5  ;;  %v4269_v17 = vrot.slane %v4268_v56, %v3025_v5  ;;  %v2411_v4 = vsel %vm942_vm3, %v2342_v14, %v2410_v49  ;;  %v2394_v27 = vsel %vm950_vm7, %v2262_v46, %v2393_v62  ;;  %v4274_v49 = vld [vmem:[#allocation27_spill] sm:$0xff] }
  0xdb   : > { %v2406_v41 = vsel %vm946_vm5, %v4267_v37, %v2405_v26  ;;  %v4271_v39 = vrot.slane %v4270_v34, %v3025_v5  ;;  %v4273_v0 = vrot.slane %v4272_v55, %v3025_v5  ;;  %v2412_v57 = vsel %vm944_vm4, %v2346_v42, %v2411_v4  ;;  %2779 = vmatprep.mubr.msk.f32.mxu1 %vm2416_vm11, %v2394_v27 }
  0xdc   : > { %v2384_v43 = vsel %vm944_vm4, %v4269_v17, %v2383_v40  ;;  %v4275_v18 = vrot.slane %v4274_v49, %v3025_v5  ;;  %v2358_v2 = vrot.slane %v3832_v50, %v3025_v5  ;;  %v2413_v25 = vsel %vm946_vm5, %v2350_v1, %v2412_v57  ;;  %2780 = vmatmul.mubr.msk.f32.vlgmr.msra.gmra.mrb[0].mxu1 %vm2416_vm11, %v2401_v31 }
  0xdd   : > { %v2407_v15 = vsel %vm948_vm6, %v4271_v39, %v2406_v41  ;;  %v2385_v60 = vsel %vm946_vm5, %v4273_v0, %v2384_v43  ;;  %v2414_v42 = vsel %vm948_vm6, %v2354_v53, %v2413_v25 }
  0xde   : > { %v2408_v14 = vsel %vm950_vm7, %v2326_v22, %v2407_v15  ;;  %v2386_v16 = vsel %vm948_vm6, %v4275_v18, %v2385_v60  ;;  %v2415_v50 = vsel %vm950_vm7, %v2358_v2, %v2414_v42 }
  0xdf   : > { %v2387_v47 = vsel %vm950_vm7, %v2230_v30, %v2386_v16  ;;  %2782 = vmatprep.mubr.msk.f32.mxu1 %vm2416_vm11, %v2408_v14 }
  0xe0   : > { %2777 = vmatmul.mubr.msk.f32.gmra.mrb[2].mxu0 %vm2416_vm11, %v2387_v47  ;;  %2783 = vmatmul.mubr.msk.f32.gmra.mrb[2].mxu1 %vm2416_vm11, %v2415_v50 }
 0x1a5   : > { %v2775_v1 = vpop.f32.mrb[0].mxu0 }
 0x1a6   : > { %v2509_v5 = vadd.f32 %v2775_v1, %v2744_v29  ;;  %v2503_v45 = vpop.f32.mrb[1].mxu0 }
 0x1a7   : > { %v2504_v53 = vadd.f32 %v2744_v29, %v2503_v45 }
 0x1a8   : > { %2544 = vst.msk [vmem:[%s262_s13 + $0x8] sm:$0xff] %vm2542_vm12, %v2509_v5 }
 0x1a9   : > { %2543 = vst.msk [vmem:[%s262_s13] sm:$0xff] %vm2542_vm12, %v2504_v53 }
 0x1af   : > { %v2781_v9 = vpop.f32.mrb[0].mxu1 }
 0x1b0   : > { %v2529_v24 = vadd.f32 %v2781_v9, %v2744_v29  ;;  %v2523_v44 = vpop.f32.mrb[1].mxu1 }
 0x1b1   : > { %v2524_v52 = vadd.f32 %v2744_v29, %v2523_v44 }
 0x1b2   : > { %2548 = vst.msk [vmem:[%s262_s13 + $0x28] sm:$0xff] %vm2542_vm12, %v2529_v24 }
 0x1b3   : > { %v2778_v51 = vpop.f32.mrb[2].mxu0  ;;  %2547 = vst.msk [vmem:[%s262_s13 + $0x20] sm:$0xff] %vm2542_vm12, %v2524_v52  ;;  %v2784_v48 = vpop.f32.mrb[2].mxu1 }
 0x1b4   : > { %v2519_v3 = vadd.f32 %v2778_v51, %v2744_v29  ;;  %v2513_v8 = vpop.f32.mrb[3].mxu0  ;;  %v2539_v13 = vadd.f32 %v2784_v48, %v2744_v29  ;;  %v2533_v33 = vpop.f32.mrb[3].mxu1 }
 0x1b5   : > { %v2514_v10 = vadd.f32 %v2744_v29, %v2513_v8  ;;  %v2534_v38 = vadd.f32 %v2744_v29, %v2533_v33 }
 0x1b6   : > { %2546 = vst.msk [vmem:[%s262_s13 + $0x18] sm:$0xff] %vm2542_vm12, %v2519_v3  ;;  %2550 = vst.msk [vmem:[%s262_s13 + $0x38] sm:$0xff] %vm2542_vm12, %v2539_v13 }
 0x1b7   : > { %2545 = vst.msk [vmem:[%s262_s13 + $0x10] sm:$0xff] %vm2542_vm12, %v2514_v10  ;;  %2549 = vst.msk [vmem:[%s262_s13 + $0x30] sm:$0xff] %vm2542_vm12, %v2534_v38 }
 0x1b8   : > { %2863 = shalt.err (!%p2860_p5)
}
 0x1b9   : > { %s2864_s6 = scalar_lea.hbm %s4047_s25, 1024  ;;  %s2868_s9 = scalar_lea.hbm %s4105_s4, 2048 }
 0x1ba   : > { %p2865_p6 = scmp.ne.s32.totalorder %s4047_s25, %s2864_s6  ;;  %p2869_p10 = scmp.lt.u32.totalorder %s4047_s25, %s4105_s4 }
 0x1bb   : > { %p2870_p11 = scmp.lt.u32.totalorder %s2868_s9, %s2864_s6  ;;  %p2872_p13 = scmp.lt.u32.totalorder %s2864_s6, %s4047_s25 }
 0x1bc   : > { %p2866_p7 = pnand %p2865_p6, %p3004_p4 }
 0x1bd   : > { %p2871_p12 = por %p2870_p11, %p2869_p10 }
 0x1be   : > { %p2867_p9 = pneg %p2866_p7 }
 0x1bf   : > { %p2873_p0 = por %p2872_p13, %p2871_p12 }
 0x1c1   : > { %p2874_p1 = pnand %p2873_p0, %p2867_p9 }
 0x1c3   : > { %2877 = shalt.err (!%p2874_p1)
}
 0x1c4   : > { %s2937_s12 = smov 128   ;;  %s2938_s13 = smov 8  }
 0x1c5   : > { %2787 = dma.vmem_to_hbm [thread:$0]  (%p3004_p4), %s4049_s20, 1024, %s4047_s25, %s4055_s18, %s2937_s12, %s2937_s12, %s2938_s13  }
 0x1c6 PF: > { %p2793_p2 = scmp.ge.s32.totalorder %s2928_s19, 2  ;;  %s2582_s14 = sand.u32 1, %s2908_s15  }
 0x1c7   : > { %s2583_s21 = scalar_lea.sflag [#allocation3], %s2582_s14 }
 0x1c8   : > { %p2790_p3 = pnand %p2793_p2, %p3011_p8 }
 0x1ca   : > { %2903 = dma.done.wait (!%p2790_p3), %s2583_s21, 1024  }
 0x1cb   : > { %2905 = vsyncadd (!%p2790_p3), %s2583_s21, 4294966272  ;;  %s17_s19 = sadd.s32 1, %s2928_s19   ;;  %s4276_s15 = smov %s2912_s16 }
 0x1cc   : > { %p14_p5 = scmp.ge.s32.totalorder %s17_s19, 4   ;;  %s4277_s16 = smov %s2916_s17 }
 0x1cd   : > { %s4278_s17 = smov %s3017_s27  ;;  %s4279_s18 = smov %s2924_s1 }
 0x1ce   : > { %s4280_s1 = smov %s4282_s22  ;;  %16 = sbr.rel (!%p14_p5) target bundleno = 4 (0x4), region = 74 }
 0x1d5   :  { %2588 = vsyncpa [#allocation3], 1 }
 0x1d6   :  { %2590 = vsyncpa [#allocation3 + $0x1], 1 }

</bundles_post_ra>
